<compile_context>
chip_gen: v7x
topology: tpu7x:2x2x1
jax: 0.10.0
libtpu: 0.0.40
codegen_flags: <defaults>
</compile_context>

<pallas_src>
import functools

import jax
import jax.numpy as jnp
from jax import lax
from jax.experimental import pallas as pl
from jax.experimental.pallas import tpu as pltpu

NEG_SLOPE = 0.01  # nn.LeakyReLU default
BN_EPS = 1e-5     # nn.BatchNorm2d default


def _default_compute_dtype():
    # bf16 feeds the MXU on real TPU hardware; elsewhere (CPU interpreter)
    # fall back to f32, since the CPU dot runtime rejects BF16xBF16=F32.
    return jnp.bfloat16 if jax.default_backend() == "tpu" else jnp.float32


def _tpu_kind():
    if jax.default_backend() != "tpu":
        return None
    try:
        return jax.devices()[0].device_kind.lower()
    except Exception:
        return None


def _vmem_budgets():
    """Returns (per-tile working-set budget bytes, vmem_limit_bytes or None)."""
    kind = _tpu_kind()
    if kind is None:
        return 8 * 1024 * 1024, None
    if "v7" in kind or "7x" in kind:
        return 20 * 1024 * 1024, 48 * 1024 * 1024      # 64 MiB physical VMEM
    if "v5" in kind or "v6" in kind:
        return 32 * 1024 * 1024, 96 * 1024 * 1024      # 128 MiB physical VMEM
    return 16 * 1024 * 1024, None


def _spring_kernel(*refs, K, tH, W, p, has_halo, has_skip, compute_dtype):
    """One (batch, H-tile) block of the fused Spring forward.

    Blocks (channels-first, spatial-last):
      xm   : (1, Cin, rows, Wp)   main rows of the zero-padded input
      xh   : (1, Cin, 8,    Wp)   halo rows below the tile (first 2p used)
      w1   : (K*K, Cmid, Cin)     conv1 weights, BN1 scale folded in
      b1   : (Cmid, 1)            folded BN1 bias (f32)
      w2   : (Cout, Cmid)         1x1 conv weights, BN2 scale folded in
      b2   : (Cout, 1)            folded BN2 bias (f32)
      skip : (1, Cout, tH*W)      optional residual
      out  : (1, Cout, tH*W)      channels-first, lane-dense output (f32)
    """
    it = iter(refs)
    xm_ref = next(it)
    xh_ref = next(it) if has_halo else None
    w1_ref = next(it)
    b1_ref = next(it)
    w2_ref = next(it)
    b2_ref = next(it)
    skip_ref = next(it) if has_skip else None
    out_ref = next(it)

    Cin = xm_ref.shape[1]
    M = tH * W

    xt = xm_ref[0]                                        # (Cin, rows, Wp)
    if has_halo:
        halo = xh_ref[0]                                  # (Cin, 8, Wp)
        xt = jnp.concatenate([xt, halo[:, :2 * p, :]], axis=1)
    # TODO(synk): an overlapping-window (element-offset) BlockSpec would avoid
    # this per-step copy of the main tile.

    # --- KxK conv as K*K shifted channels-first GEMMs, f32 accumulation ------
    acc = None
    for ky in range(K):
        for kx in range(K):
            xs = xt[:, ky:ky + tH, kx:kx + W].reshape(Cin, M)
            part = jnp.dot(w1_ref[ky * K + kx], xs,
                           preferred_element_type=jnp.float32)   # (Cmid, M)
            acc = part if acc is None else acc + part

    h = acc + b1_ref[...]                                 # (Cmid, M), f32
    h = jnp.maximum(h, NEG_SLOPE * h)                     # LeakyReLU
    # Dropout: identity in eval mode.

    # --- 1x1 conv GEMM (BN2 scale pre-folded), still channels-first ----------
    y = jnp.dot(w2_ref[...], h.astype(compute_dtype),
                preferred_element_type=jnp.float32)       # (Cout, M)
    y = y + b2_ref[...]
    y = jnp.maximum(y, NEG_SLOPE * y)
    if has_skip:
        y = y + skip_ref[0].astype(jnp.float32)
    out_ref[0] = y.astype(out_ref.dtype)


def _choose_tile_h(H, W, p, Cin, Cmid, Cout, K, itemsize, budget_bytes,
                   has_skip):
    """Largest H-tile whose per-step working set fits the VMEM budget."""
    Wp = W + 2 * p
    cands = [t for t in range(8, H + 1, 8) if H % t == 0]
    if H not in cands:
        cands.append(H)
    aligned = [t for t in cands if (t * W) % 128 == 0]
    if aligned:
        cands = aligned                     # prefer lane-dense output blocks

    def est(tH):
        M = tH * W
        rows = tH + (8 if tH < H else 2 * p)
        return (2 * Cin * rows * Wp * itemsize          # input blocks (x2 buf)
                + 2 * Cin * M * itemsize                # live shifted slices
                + M * Cmid * (4 + itemsize)             # acc (f32) + bf16 copy
                + M * Cout * 4                          # y
                + 2 * Cout * M * 4                      # output block (x2 buf)
                + (2 * Cout * M * itemsize if has_skip else 0)
                + 2 * (K * K * Cmid * Cin + Cout * Cmid) * itemsize)

    fitting = [t for t in cands if est(t) <= budget_bytes]
    if fitting:
        return max(fitting)
    return min(cands, key=est)


def spring_forward(x, params, skip_data=None, *, kernel=3, tile_h=None,
                   compute_dtype=None):
    """x: (B, Cin, H, W) float32 (NCHW, like PyTorch). Returns (B, Cout, H, W)."""
    w1, s1, b1, w2, s2, b2 = params
    if compute_dtype is None:
        compute_dtype = _default_compute_dtype()
    K = kernel
    p = K // 2
    B, Cin, H, W = x.shape
    Cmid = w1.shape[-1]
    Cout = w2.shape[-1]
    assert w1.shape == (K, K, Cin, Cmid)
    assert 2 * p <= 8, "kernel sizes > 9 not supported by the 8-row halo block"
    itemsize = jnp.dtype(compute_dtype).itemsize

    budget, vmem_limit = _vmem_budgets()
    if tile_h is None:
        tile_h = _choose_tile_h(H, W, p, Cin, Cmid, Cout, K, itemsize, budget,
                                skip_data is not None)
    tH = tile_h
    assert H % tH == 0, "tile_h must divide H"
    assert tH % 8 == 0 or tH == H, "tile_h must be a multiple of 8 (or == H)"
    nH = H // tH
    M = tH * W
    Wp = W + 2 * p
    has_halo = (p > 0) and (nH > 1)
    main_rows = (H + 2 * p) if (p > 0 and nH == 1) else tH

    # Fold BN scale (eval-mode running stats) into the conv weights,
    # channels-first orientation for the in-kernel GEMMs.
    w1f = jnp.transpose(w1 * s1, (0, 1, 3, 2)).reshape(K * K, Cmid, Cin)
    w1f = w1f.astype(compute_dtype)
    w2f = jnp.transpose(w2 * s2, (1, 0)).astype(compute_dtype)
    b1r = b1.reshape(Cmid, 1).astype(jnp.float32)
    b2r = b2.reshape(Cout, 1).astype(jnp.float32)

    # Keep NCHW (no transpose pass); spatial zero-pad only.  When H-tiling is
    # active, pad the bottom up to 8 rows so the halo block stays in range.
    if p == 0:
        pad_lo, pad_hi = 0, 0
    elif has_halo:
        pad_lo, pad_hi = p, 8 - p
    else:
        pad_lo, pad_hi = p, p
    xpad = jnp.pad(x.astype(compute_dtype),
                   ((0, 0), (0, 0), (pad_lo, pad_hi), (p, p)))

    has_skip = skip_data is not None
    inputs = [xpad]
    in_specs = [pl.BlockSpec((1, Cin, main_rows, Wp),
                             lambda b, h: (b, 0, h, 0))]
    if has_halo:
        halo_step = tH // 8
        inputs.append(xpad)
        in_specs.append(pl.BlockSpec(
            (1, Cin, 8, Wp), lambda b, h: (b, 0, (h + 1) * halo_step, 0)))
    inputs += [w1f, b1r, w2f, b2r]
    in_specs += [
        pl.BlockSpec((K * K, Cmid, Cin), lambda b, h: (0, 0, 0)),
        pl.BlockSpec((Cmid, 1), lambda b, h: (0, 0)),
        pl.BlockSpec((Cout, Cmid), lambda b, h: (0, 0)),
        pl.BlockSpec((Cout, 1), lambda b, h: (0, 0)),
    ]
    if has_skip:
        assert skip_data.shape == (B, Cout, H, W)
        inputs.append(skip_data.reshape(B, Cout, H * W).astype(compute_dtype))
        in_specs.append(pl.BlockSpec((1, Cout, M), lambda b, h: (b, 0, h)))

    out_spec = pl.BlockSpec((1, Cout, M), lambda b, h: (b, 0, h))

    kern = functools.partial(_spring_kernel, K=K, tH=tH, W=W, p=p,
                             has_halo=has_halo, has_skip=has_skip,
                             compute_dtype=compute_dtype)

    flops_per_tile = 2 * M * (K * K * Cin) * Cmid + 2 * M * Cmid * Cout
    bytes_accessed = (xpad.size * itemsize
                      + (B * (nH - 1) * Cin * 8 * Wp * itemsize if has_halo else 0)
                      + B * Cout * H * W * 4
                      + (B * Cout * H * W * itemsize if has_skip else 0)
                      + (w1f.size + w2f.size) * itemsize
                      + (b1r.size + b2r.size) * 4)

    cp_kwargs = dict(dimension_semantics=("parallel", "parallel"))
    if vmem_limit is not None:
        cp_kwargs["vmem_limit_bytes"] = vmem_limit

    out_flat = pl.pallas_call(
        kern,
        out_shape=jax.ShapeDtypeStruct((B, Cout, H * W), jnp.float32),
        grid=(B, nH),
        in_specs=in_specs,
        out_specs=out_spec,
        compiler_params=pltpu.CompilerParams(**cp_kwargs),
        cost_estimate=pl.CostEstimate(
            flops=int(flops_per_tile * B * nH),
            transcendentals=0,
            bytes_accessed=int(bytes_accessed)),
    )(*inputs)

    return out_flat.reshape(B, Cout, H, W)


def make_params(key, in_channels, out_channels, mid_channels, kernel=3):
    """Synthetic parameters: conv weights (HWIO) + BN gamma/beta/running stats
    pre-converted to per-channel (scale, bias)."""
    k1, k2, k3, k4, k5, k6 = jax.random.split(key, 6)
    K = kernel
    w1 = jax.random.normal(k1, (K, K, in_channels, mid_channels), jnp.float32) * 0.1
    w2 = jax.random.normal(k2, (mid_channels, out_channels), jnp.float32) * 0.1

    gamma1 = 1.0 + 0.1 * jax.random.normal(k3, (mid_channels,), jnp.float32)
    beta1 = 0.05 * jax.random.normal(k4, (mid_channels,), jnp.float32)
    mean1 = 0.02 * jnp.arange(mid_channels, dtype=jnp.float32)
    var1 = 1.0 + 0.01 * jnp.arange(mid_channels, dtype=jnp.float32)
    s1 = gamma1 / jnp.sqrt(var1 + BN_EPS)
    b1 = beta1 - mean1 * s1

    gamma2 = 1.0 + 0.1 * jax.random.normal(k5, (out_channels,), jnp.float32)
    beta2 = 0.05 * jax.random.normal(k6, (out_channels,), jnp.float32)
    mean2 = 0.03 * jnp.arange(out_channels, dtype=jnp.float32)
    var2 = 1.0 + 0.02 * jnp.arange(out_channels, dtype=jnp.float32)
    s2 = gamma2 / jnp.sqrt(var2 + BN_EPS)
    b2 = beta2 - mean2 * s2

    return (w1, s1, b1, w2, s2, b2)


def spring_reference(x, params, skip_data=None, *, kernel=3):
    """Pure-JAX f32 reference (eval-mode Spring), NCHW in / NCHW out."""
    w1, s1, b1, w2, s2, b2 = params
    xh = jnp.transpose(x, (0, 2, 3, 1))
    h = lax.conv_general_dilated(
        xh, w1, window_strides=(1, 1), padding='SAME',
        dimension_numbers=('NHWC', 'HWIO', 'NHWC'))
    h = h * s1 + b1
    h = jnp.where(h > 0, h, NEG_SLOPE * h)
    y = jnp.einsum('bhwm,mo->bhwo', h, w2)
    y = y * s2 + b2
    y = jnp.where(y > 0, y, NEG_SLOPE * y)
    y = jnp.transpose(y, (0, 3, 1, 2))
    if skip_data is not None:
        y = y + skip_data
    return y


if __name__ == "__main__":
    key = jax.random.PRNGKey(0)
    kx_, ks_, kp_ = jax.random.split(key, 3)

    B, Cin, H, W = 2, 4, 16, 16
    Cmid, Cout, K = 8, 4, 3

    x = jax.random.normal(kx_, (B, Cin, H, W), jnp.float32)
    skip = jax.random.normal(ks_, (B, Cout, H, W), jnp.float32)
    params = make_params(kp_, Cin, Cout, Cmid, K)

    # Skip path, forced H-tiling (grid (2, 2)) so the halo stitching is exercised.
    out = spring_forward(x, params, skip_data=skip, kernel=K, tile_h=8)
    out = jax.block_until_ready(out)
    ref = spring_reference(x, params, skip_data=skip, kernel=K)
    assert out.shape == (B, Cout, H, W)
    assert float(jnp.max(jnp.abs(out - ref))) < 5e-2, "mismatch vs JAX reference"

    # No-skip path, auto tile selection (single tile, no halo block).
    out2 = jax.block_until_ready(spring_forward(x, params, kernel=K))
    ref2 = spring_reference(x, params, kernel=K)
    assert float(jnp.max(jnp.abs(out2 - ref2))) < 5e-2, "mismatch (no skip)"

    print("KERNEL_OK")
</pallas_src>

<mosaic_0001>
module attributes {stable_mosaic.version = 11 : i64} {
  func.func @_spring_kernel(%arg0: i32, %arg1: i32, %arg2: memref<1x4x8x18xf32, #tpu.memory_space<vmem>>, %arg3: memref<1x4x8x18xf32, #tpu.memory_space<vmem>>, %arg4: memref<9x8x4xf32, #tpu.memory_space<vmem>>, %arg5: memref<8x1xf32, #tpu.memory_space<vmem>>, %arg6: memref<4x8xf32, #tpu.memory_space<vmem>>, %arg7: memref<4x1xf32, #tpu.memory_space<vmem>>, %arg8: memref<1x4x128xf32, #tpu.memory_space<vmem>>, %arg9: memref<1x4x128xf32, #tpu.memory_space<vmem>>) attributes {dimension_semantics = [#tpu.dimension_semantics<parallel>, #tpu.dimension_semantics<parallel>], iteration_bounds = array<i64: 2, 2>, scalar_prefetch = 0 : i64, scratch_operands = 0 : i64, tpu.core_type = #tpu.core_type<tc>, window_params = [{transform_indices = @transform_0, window_bounds = array<i64: 1, 4, 8, 18>}, {transform_indices = @transform_1, window_bounds = array<i64: 1, 4, 8, 18>}, {pipeline_mode = #tpu.pipeline_mode<synchronous>, transform_indices = @transform_2, window_bounds = array<i64: 9, 8, 4>}, {pipeline_mode = #tpu.pipeline_mode<synchronous>, transform_indices = @transform_3, window_bounds = array<i64: 8, 1>}, {pipeline_mode = #tpu.pipeline_mode<synchronous>, transform_indices = @transform_4, window_bounds = array<i64: 4, 8>}, {pipeline_mode = #tpu.pipeline_mode<synchronous>, transform_indices = @transform_5, window_bounds = array<i64: 4, 1>}, {transform_indices = @transform_6, window_bounds = array<i64: 1, 4, 128>}, {transform_indices = @transform_7, window_bounds = array<i64: 1, 4, 128>}]} {
    %c0 = arith.constant 0 : index
    %c0_0 = arith.constant 0 : index
    %c0_1 = arith.constant 0 : index
    %c0_2 = arith.constant 0 : index
    %0 = vector.load %arg2[%c0, %c0_0, %c0_1, %c0_2] : memref<1x4x8x18xf32, #tpu.memory_space<vmem>>, vector<1x4x8x18xf32>
    %1 = vector.shape_cast %0 : vector<1x4x8x18xf32> to vector<4x8x18xf32>
    %c0_3 = arith.constant 0 : index
    %c0_4 = arith.constant 0 : index
    %c0_5 = arith.constant 0 : index
    %c0_6 = arith.constant 0 : index
    %2 = vector.load %arg3[%c0_3, %c0_4, %c0_5, %c0_6] : memref<1x4x8x18xf32, #tpu.memory_space<vmem>>, vector<1x4x8x18xf32>
    %3 = vector.shape_cast %2 : vector<1x4x8x18xf32> to vector<4x8x18xf32>
    %4 = vector.extract_strided_slice %3 {offsets = [0, 0, 0], sizes = [4, 2, 18], strides = [1, 1, 1]} : vector<4x8x18xf32> to vector<4x2x18xf32>
    %5 = tpu.concatenate %1, %4 in 1 : vector<4x8x18xf32>, vector<4x2x18xf32> -> vector<4x10x18xf32>
    %6 = vector.extract_strided_slice %5 {offsets = [0, 0, 0], sizes = [4, 8, 16], strides = [1, 1, 1]} : vector<4x10x18xf32> to vector<4x8x16xf32>
    %7 = vector.shape_cast %6 : vector<4x8x16xf32> to vector<4x128xf32>
    %c0_7 = arith.constant 0 : index
    %c0_8 = arith.constant 0 : index
    %c0_9 = arith.constant 0 : index
    %8 = vector.load %arg4[%c0_7, %c0_8, %c0_9] : memref<9x8x4xf32, #tpu.memory_space<vmem>>, vector<1x8x4xf32>
    %9 = vector.shape_cast %8 : vector<1x8x4xf32> to vector<8x4xf32>
    %cst = arith.constant dense<0.000000e+00> : vector<8x128xf32>
    %10 = tpu.matmul %9, %7, %cst {dimension_numbers = #tpu.dot_dimension_numbers<[1], [0], [0], [1], [0, 0, 1, 1], [], []>} : vector<8x4xf32>, vector<4x128xf32>, vector<8x128xf32> -> vector<8x128xf32>
    %11 = vector.extract_strided_slice %5 {offsets = [0, 0, 1], sizes = [4, 8, 16], strides = [1, 1, 1]} : vector<4x10x18xf32> to vector<4x8x16xf32>
    %12 = vector.shape_cast %11 : vector<4x8x16xf32> to vector<4x128xf32>
    %c1 = arith.constant 1 : index
    %c0_10 = arith.constant 0 : index
    %c0_11 = arith.constant 0 : index
    %13 = vector.load %arg4[%c1, %c0_10, %c0_11] : memref<9x8x4xf32, #tpu.memory_space<vmem>>, vector<1x8x4xf32>
    %14 = vector.shape_cast %13 : vector<1x8x4xf32> to vector<8x4xf32>
    %cst_12 = arith.constant dense<0.000000e+00> : vector<8x128xf32>
    %15 = tpu.matmul %14, %12, %cst_12 {dimension_numbers = #tpu.dot_dimension_numbers<[1], [0], [0], [1], [0, 0, 1, 1], [], []>} : vector<8x4xf32>, vector<4x128xf32>, vector<8x128xf32> -> vector<8x128xf32>
    %16 = arith.addf %10, %15 : vector<8x128xf32>
    %17 = vector.extract_strided_slice %5 {offsets = [0, 0, 2], sizes = [4, 8, 16], strides = [1, 1, 1]} : vector<4x10x18xf32> to vector<4x8x16xf32>
    %18 = vector.shape_cast %17 : vector<4x8x16xf32> to vector<4x128xf32>
    %c2 = arith.constant 2 : index
    %c0_13 = arith.constant 0 : index
    %c0_14 = arith.constant 0 : index
    %19 = vector.load %arg4[%c2, %c0_13, %c0_14] : memref<9x8x4xf32, #tpu.memory_space<vmem>>, vector<1x8x4xf32>
    %20 = vector.shape_cast %19 : vector<1x8x4xf32> to vector<8x4xf32>
    %cst_15 = arith.constant dense<0.000000e+00> : vector<8x128xf32>
    %21 = tpu.matmul %20, %18, %cst_15 {dimension_numbers = #tpu.dot_dimension_numbers<[1], [0], [0], [1], [0, 0, 1, 1], [], []>} : vector<8x4xf32>, vector<4x128xf32>, vector<8x128xf32> -> vector<8x128xf32>
    %22 = arith.addf %16, %21 : vector<8x128xf32>
    %23 = vector.extract_strided_slice %5 {offsets = [0, 1, 0], sizes = [4, 8, 16], strides = [1, 1, 1]} : vector<4x10x18xf32> to vector<4x8x16xf32>
    %24 = vector.shape_cast %23 : vector<4x8x16xf32> to vector<4x128xf32>
    %c3 = arith.constant 3 : index
    %c0_16 = arith.constant 0 : index
    %c0_17 = arith.constant 0 : index
    %25 = vector.load %arg4[%c3, %c0_16, %c0_17] : memref<9x8x4xf32, #tpu.memory_space<vmem>>, vector<1x8x4xf32>
    %26 = vector.shape_cast %25 : vector<1x8x4xf32> to vector<8x4xf32>
    %cst_18 = arith.constant dense<0.000000e+00> : vector<8x128xf32>
    %27 = tpu.matmul %26, %24, %cst_18 {dimension_numbers = #tpu.dot_dimension_numbers<[1], [0], [0], [1], [0, 0, 1, 1], [], []>} : vector<8x4xf32>, vector<4x128xf32>, vector<8x128xf32> -> vector<8x128xf32>
    %28 = arith.addf %22, %27 : vector<8x128xf32>
    %29 = vector.extract_strided_slice %5 {offsets = [0, 1, 1], sizes = [4, 8, 16], strides = [1, 1, 1]} : vector<4x10x18xf32> to vector<4x8x16xf32>
    %30 = vector.shape_cast %29 : vector<4x8x16xf32> to vector<4x128xf32>
    %c4 = arith.constant 4 : index
    %c0_19 = arith.constant 0 : index
    %c0_20 = arith.constant 0 : index
    %31 = vector.load %arg4[%c4, %c0_19, %c0_20] : memref<9x8x4xf32, #tpu.memory_space<vmem>>, vector<1x8x4xf32>
    %32 = vector.shape_cast %31 : vector<1x8x4xf32> to vector<8x4xf32>
    %cst_21 = arith.constant dense<0.000000e+00> : vector<8x128xf32>
    %33 = tpu.matmul %32, %30, %cst_21 {dimension_numbers = #tpu.dot_dimension_numbers<[1], [0], [0], [1], [0, 0, 1, 1], [], []>} : vector<8x4xf32>, vector<4x128xf32>, vector<8x128xf32> -> vector<8x128xf32>
    %34 = arith.addf %28, %33 : vector<8x128xf32>
    %35 = vector.extract_strided_slice %5 {offsets = [0, 1, 2], sizes = [4, 8, 16], strides = [1, 1, 1]} : vector<4x10x18xf32> to vector<4x8x16xf32>
    %36 = vector.shape_cast %35 : vector<4x8x16xf32> to vector<4x128xf32>
    %c5 = arith.constant 5 : index
    %c0_22 = arith.constant 0 : index
    %c0_23 = arith.constant 0 : index
    %37 = vector.load %arg4[%c5, %c0_22, %c0_23] : memref<9x8x4xf32, #tpu.memory_space<vmem>>, vector<1x8x4xf32>
    %38 = vector.shape_cast %37 : vector<1x8x4xf32> to vector<8x4xf32>
    %cst_24 = arith.constant dense<0.000000e+00> : vector<8x128xf32>
    %39 = tpu.matmul %38, %36, %cst_24 {dimension_numbers = #tpu.dot_dimension_numbers<[1], [0], [0], [1], [0, 0, 1, 1], [], []>} : vector<8x4xf32>, vector<4x128xf32>, vector<8x128xf32> -> vector<8x128xf32>
    %40 = arith.addf %34, %39 : vector<8x128xf32>
    %41 = vector.extract_strided_slice %5 {offsets = [0, 2, 0], sizes = [4, 8, 16], strides = [1, 1, 1]} : vector<4x10x18xf32> to vector<4x8x16xf32>
    %42 = vector.shape_cast %41 : vector<4x8x16xf32> to vector<4x128xf32>
    %c6 = arith.constant 6 : index
    %c0_25 = arith.constant 0 : index
    %c0_26 = arith.constant 0 : index
    %43 = vector.load %arg4[%c6, %c0_25, %c0_26] : memref<9x8x4xf32, #tpu.memory_space<vmem>>, vector<1x8x4xf32>
    %44 = vector.shape_cast %43 : vector<1x8x4xf32> to vector<8x4xf32>
    %cst_27 = arith.constant dense<0.000000e+00> : vector<8x128xf32>
    %45 = tpu.matmul %44, %42, %cst_27 {dimension_numbers = #tpu.dot_dimension_numbers<[1], [0], [0], [1], [0, 0, 1, 1], [], []>} : vector<8x4xf32>, vector<4x128xf32>, vector<8x128xf32> -> vector<8x128xf32>
    %46 = arith.addf %40, %45 : vector<8x128xf32>
    %47 = vector.extract_strided_slice %5 {offsets = [0, 2, 1], sizes = [4, 8, 16], strides = [1, 1, 1]} : vector<4x10x18xf32> to vector<4x8x16xf32>
    %48 = vector.shape_cast %47 : vector<4x8x16xf32> to vector<4x128xf32>
    %c7 = arith.constant 7 : index
    %c0_28 = arith.constant 0 : index
    %c0_29 = arith.constant 0 : index
    %49 = vector.load %arg4[%c7, %c0_28, %c0_29] : memref<9x8x4xf32, #tpu.memory_space<vmem>>, vector<1x8x4xf32>
    %50 = vector.shape_cast %49 : vector<1x8x4xf32> to vector<8x4xf32>
    %cst_30 = arith.constant dense<0.000000e+00> : vector<8x128xf32>
    %51 = tpu.matmul %50, %48, %cst_30 {dimension_numbers = #tpu.dot_dimension_numbers<[1], [0], [0], [1], [0, 0, 1, 1], [], []>} : vector<8x4xf32>, vector<4x128xf32>, vector<8x128xf32> -> vector<8x128xf32>
    %52 = arith.addf %46, %51 : vector<8x128xf32>
    %53 = vector.extract_strided_slice %5 {offsets = [0, 2, 2], sizes = [4, 8, 16], strides = [1, 1, 1]} : vector<4x10x18xf32> to vector<4x8x16xf32>
    %54 = vector.shape_cast %53 : vector<4x8x16xf32> to vector<4x128xf32>
    %c8 = arith.constant 8 : index
    %c0_31 = arith.constant 0 : index
    %c0_32 = arith.constant 0 : index
    %55 = vector.load %arg4[%c8, %c0_31, %c0_32] : memref<9x8x4xf32, #tpu.memory_space<vmem>>, vector<1x8x4xf32>
    %56 = vector.shape_cast %55 : vector<1x8x4xf32> to vector<8x4xf32>
    %cst_33 = arith.constant dense<0.000000e+00> : vector<8x128xf32>
    %57 = tpu.matmul %56, %54, %cst_33 {dimension_numbers = #tpu.dot_dimension_numbers<[1], [0], [0], [1], [0, 0, 1, 1], [], []>} : vector<8x4xf32>, vector<4x128xf32>, vector<8x128xf32> -> vector<8x128xf32>
    %58 = arith.addf %52, %57 : vector<8x128xf32>
    %c0_34 = arith.constant 0 : index
    %c0_35 = arith.constant 0 : index
    %59 = vector.load %arg5[%c0_34, %c0_35] : memref<8x1xf32, #tpu.memory_space<vmem>>, vector<8x1xf32>
    %60 = vector.broadcast %59 : vector<8x1xf32> to vector<8x128xf32>
    %61 = arith.addf %58, %60 : vector<8x128xf32>
    %cst_36 = arith.constant 0.00999999977 : f32
    %62 = vector.broadcast %cst_36 : f32 to vector<8x128xf32>
    %63 = arith.mulf %62, %61 : vector<8x128xf32>
    %64 = arith.maximumf %61, %63 : vector<8x128xf32>
    %c0_37 = arith.constant 0 : index
    %c0_38 = arith.constant 0 : index
    %65 = vector.load %arg6[%c0_37, %c0_38] : memref<4x8xf32, #tpu.memory_space<vmem>>, vector<4x8xf32>
    %cst_39 = arith.constant dense<0.000000e+00> : vector<4x128xf32>
    %66 = tpu.matmul %65, %64, %cst_39 {dimension_numbers = #tpu.dot_dimension_numbers<[1], [0], [0], [1], [0, 0, 1, 1], [], []>} : vector<4x8xf32>, vector<8x128xf32>, vector<4x128xf32> -> vector<4x128xf32>
    %c0_40 = arith.constant 0 : index
    %c0_41 = arith.constant 0 : index
    %67 = vector.load %arg7[%c0_40, %c0_41] : memref<4x1xf32, #tpu.memory_space<vmem>>, vector<4x1xf32>
    %68 = vector.broadcast %67 : vector<4x1xf32> to vector<4x128xf32>
    %69 = arith.addf %66, %68 : vector<4x128xf32>
    %cst_42 = arith.constant 0.00999999977 : f32
    %70 = vector.broadcast %cst_42 : f32 to vector<4x128xf32>
    %71 = arith.mulf %70, %69 : vector<4x128xf32>
    %72 = arith.maximumf %69, %71 : vector<4x128xf32>
    %c0_43 = arith.constant 0 : index
    %c0_44 = arith.constant 0 : index
    %c0_45 = arith.constant 0 : index
    %73 = vector.load %arg8[%c0_43, %c0_44, %c0_45] : memref<1x4x128xf32, #tpu.memory_space<vmem>>, vector<1x4x128xf32>
    %74 = vector.shape_cast %73 : vector<1x4x128xf32> to vector<4x128xf32>
    %75 = arith.addf %72, %74 : vector<4x128xf32>
    %c0_46 = arith.constant 0 : index
    %c0_47 = arith.constant 0 : index
    %c0_48 = arith.constant 0 : index
    %76 = vector.load %arg9[%c0_46, %c0_47, %c0_48] : memref<1x4x128xf32, #tpu.memory_space<vmem>>, vector<1x4x128xf32>
    %77 = vector.shape_cast %76 : vector<1x4x128xf32> to vector<4x128xf32>
    %78 = vector.shape_cast %75 : vector<4x128xf32> to vector<1x4x128xf32>
    tpu.vector_store %arg9[%c0_46, %c0_47, %c0_48], %78 {strides = array<i32>} : memref<1x4x128xf32, #tpu.memory_space<vmem>>, vector<1x4x128xf32>,
    return
  }
  func.func @transform_0(%arg0: i32, %arg1: i32) -> (i32, i32, i32, i32) {
    %c0_i32 = arith.constant 0 : i32
    %c0_i32_0 = arith.constant 0 : i32
    %c0_i32_1 = arith.constant 0 : i32
    return %arg0, %c0_i32, %arg1, %c0_i32_0 : i32, i32, i32, i32
  }
  func.func @transform_1(%arg0: i32, %arg1: i32) -> (i32, i32, i32, i32) {
    %c1_i32 = arith.constant 1 : i32
    %0 = arith.addi %arg1, %c1_i32 : i32
    %c1_i32_0 = arith.constant 1 : i32
    %1 = arith.muli %0, %c1_i32_0 : i32
    %c0_i32 = arith.constant 0 : i32
    %c0_i32_1 = arith.constant 0 : i32
    %c0_i32_2 = arith.constant 0 : i32
    return %arg0, %c0_i32, %1, %c0_i32_1 : i32, i32, i32, i32
  }
  func.func @transform_2(%arg0: i32, %arg1: i32) -> (i32, i32, i32) {
    %c0_i32 = arith.constant 0 : i32
    %c0_i32_0 = arith.constant 0 : i32
    %c0_i32_1 = arith.constant 0 : i32
    %c0_i32_2 = arith.constant 0 : i32
    return %c0_i32, %c0_i32_0, %c0_i32_1 : i32, i32, i32
  }
  func.func @transform_3(%arg0: i32, %arg1: i32) -> (i32, i32) {
    %c0_i32 = arith.constant 0 : i32
    %c0_i32_0 = arith.constant 0 : i32
    %c0_i32_1 = arith.constant 0 : i32
    return %c0_i32, %c0_i32_0 : i32, i32
  }
  func.func @transform_4(%arg0: i32, %arg1: i32) -> (i32, i32) {
    %c0_i32 = arith.constant 0 : i32
    %c0_i32_0 = arith.constant 0 : i32
    %c0_i32_1 = arith.constant 0 : i32
    return %c0_i32, %c0_i32_0 : i32, i32
  }
  func.func @transform_5(%arg0: i32, %arg1: i32) -> (i32, i32) {
    %c0_i32 = arith.constant 0 : i32
    %c0_i32_0 = arith.constant 0 : i32
    %c0_i32_1 = arith.constant 0 : i32
    return %c0_i32, %c0_i32_0 : i32, i32
  }
  func.func @transform_6(%arg0: i32, %arg1: i32) -> (i32, i32, i32) {
    %c0_i32 = arith.constant 0 : i32
    %c0_i32_0 = arith.constant 0 : i32
    return %arg0, %c0_i32, %arg1 : i32, i32, i32
  }
  func.func @transform_7(%arg0: i32, %arg1: i32) -> (i32, i32, i32) {
    %c0_i32 = arith.constant 0 : i32
    %c0_i32_0 = arith.constant 0 : i32
    return %arg0, %c0_i32, %arg1 : i32, i32, i32
  }
}

</mosaic_0001>

<bundles_post_ra>
// kernel: tpu_custom_call.1
= control target key start
LH: loop header
LB: loop body
LE: loop exit
PB: predicated region body
PF: predicated region fallthrough
CT: control target
= control target key end

     0   :  { %s3556_s0 = inlined_call_operand.vmem [shape: f32[2,4,24,18], index: 0, kind: input, shape index: {}]   ;;  %s3557_s1 = inlined_call_operand.vmem [shape: f32[2,4,24,18], index: 1, kind: input, shape index: {}]   ;;  %s3558_s2 = inlined_call_operand.vmem [shape: f32[9,8,4], index: 2, kind: input, shape index: {}]   ;;  %s3559_s3 = inlined_call_operand.vmem [shape: f32[8,1], index: 3, kind: input, shape index: {}]   ;;  %s3560_s4 = inlined_call_operand.vmem [shape: f32[4,8], index: 4, kind: input, shape index: {}]   ;;  %s3561_s5 = inlined_call_operand.vmem [shape: f32[4,1], index: 5, kind: input, shape index: {}]   ;;  %s3562_s6 = inlined_call_operand.vmem [shape: f32[2,4,256], index: 6, kind: input, shape index: {}]   ;;  %s3563_s7 = inlined_call_operand.hbm [shape: f32[2,4,256], index: 7, kind: output, shape index: {}]  }
   0x1   :  { %3567 = sst [smem:[#allocation9_spill]] %s3556_s0 }
   0x2   :  { %3568 = sst [smem:[#allocation10_spill]] %s3557_s1 }
   0x3   :  { %3569 = sst [smem:[#allocation11_spill]] %s3558_s2 }
   0x4   :  { %3570 = sst [smem:[#allocation12_spill]] %s3559_s3 }
   0x5   :  { %3571 = sst [smem:[#allocation13_spill]] %s3562_s6 }
   0x6   :  { %3572 = sst [smem:[#allocation14_spill]] %s3563_s7 }
   0x7   :  { %12 = vsyncpa [#allocation5], 0 }
   0x8   :  { %14 = vsyncpa [#allocation5 + $0x1], 0  ;;  %s2837_s24 = smov 0   ;;  %s2839_s25 = smov 0  }
   0x9   :  { %s2841_s26 = smov 0   ;;  %s2843_s27 = smov 0  }
   0xa   :  { %s2845_s28 = smov 0   ;;  %s2847_s29 = smov 0  }
   0xb   :  { %s2849_s30 = smov 0   ;;  %s2851_s8 = smov 0  }
   0xc   :  { %s2853_s9 = smov 0   ;;  %s2855_s10 = smov 0  }
   0xd LB: > { %s2442_s11 = sadd.s32 4294967295, %s2780_s10   ;;  %s2443_s12 = sadd.s32 4294967294, %s2780_s10   ;;  %s2780_s10 = sphi %s2855_s10, %s20_s10   ;;  %s2776_s9 = sphi %s2853_s9, %s3596_s9   ;;  %s2772_s8 = sphi %s2851_s8, %s3595_s8   ;;  %s2768_s30 = sphi %s2849_s30, %s3594_s30   ;;  %s2764_s29 = sphi %s2847_s29, %s3593_s29   ;;  %s2760_s28 = sphi %s2845_s28, %s3592_s28   ;;  %s2756_s27 = sphi %s2843_s27, %s3591_s27   ;;  %s2752_s26 = sphi %s2841_s26, %s3590_s26   ;;  %s2748_s25 = sphi %s2839_s25, %s3589_s25   ;;  %s2744_s24 = sphi %s2837_s24, %s3588_s24  }
   0xe   : > { %s29_s13 = sadd.s32 1, %s2772_s8  ;;  %s32_s14 = sadd.s32 1, %s2776_s9 }
   0xf   : > { %p30_p0 = scmp.ge.s32.totalorder %s29_s13, 2  ;;  %s41_s15 = sadd.s32 1, %s2760_s28 }
  0x10   : > { %p48_p1 = scmp.ne.s32.totalorder %s2760_s28, %s2756_s27  ;;  %p49_p2 = scmp.eq.s32.totalorder %s2780_s10, 0 }
  0x11   : > { %s2895_s16 = scalar_select %p30_p0, 0, %s29_s13  }
  0x12   : > { %s3598_s14 = smov (!%p30_p0, %s32_s14), %s2776_s9  ;;  %p2905_p3 = por %p49_p2, %p48_p1 }
  0x13   : > { %3573 = sst [smem:[#allocation7_spill]] %s2895_s16  ;;  %s37_s17 = ssub.s32 %s2772_s8, %s2895_s16 }
  0x14   : > { %p34_p4 = scmp.ge.s32.totalorder %s3598_s14, 2  ;;  %s65_s19 = sadd.s32 1, %s2895_s16 }
  0x15   : > { %s67_s20 = ssub.s32 %s29_s13, %s65_s19  ;;  %s71_s21 = sadd.s32 1, %s2752_s26 }
  0x16   : > { %s3600_s14 = smov (%p34_p4, %s3598_s14), 0  ;;  %p78_p5 = scmp.ne.s32.totalorder %s2752_s26, %s2748_s25 }
  0x17   : > { %3575 = sst [smem:[#allocation8_spill]] %s3600_s14  ;;  %p222_p6 = scmp.eq.s32.totalorder %s2442_s11, 3 }
  0x18   : > { %s36_s22 = ssub.s32 %s2776_s9, %s3600_s14  ;;  %p227_p7 = scmp.ne.s32.totalorder %s2756_s27, %s2744_s24 }
  0x19   : > { %s38_s23 = sor.u32 %s37_s17, %s36_s22  ;;  %s68_s7 = sor.u32 %s67_s20, %s36_s22 }
  0x1a   : > { %p39_p8 = scmp.eq.s32.totalorder %s38_s23, 0  ;;  %p69_p9 = scmp.eq.s32.totalorder %s68_s7, 0 }
  0x1b   : > { %p2921_p10 = por %p78_p5, %p49_p2  ;;  %p2928_p11 = por %p222_p6, %p48_p1 }
  0x1c   : > { %s2933_s19 = scalar_select %p39_p8, %s2760_s28, %s41_s15  }
  0x1d   : > { %s2936_s16 = scalar_select %p69_p9, %s2752_s26, %s71_s21  }
  0x1e   : > { %p228_p12 = scmp.eq.s32.totalorder %s2443_s12, 3  ;;  %p2445_p0 = scmp.ge.s32.totalorder %s2780_s10, 4 }
  0x20   : > { %p2938_p13 = por %p228_p12, %p227_p7  ;;  %256 = sbr.rel (%p2445_p0) target bundleno = 63 (0x3f), region = 32 }
  0x27   : > { %259 = sbr.rel (!%p2905_p3) target bundleno = 51 (0x33), region = 36  ;;  %s261_s7 = sand.u32 (%p2905_p3), 1, %s2760_s28  }
  0x28   : > { %s2562_s17 = smul.u32 (%p2905_p3), 12, %s2776_s9  ;;  %s2446_s15 = sshll.u32 (%p2905_p3), %s261_s7, 5 }
  0x29   : > { %s3579_s0 = sld [smem:[#allocation9_spill]] (%p2905_p3)  ;;  %s263_s14 = scalar_lea.vmem (%p2905_p3), [#allocation2], %s2446_s15 }
  0x2a   : > { %s265_s20 = sadd.s32 (%p2905_p3), %s2772_s8, %s2562_s17 }
  0x2b   : > { %s2447_s21 = sshll.u32 (%p2905_p3), %s265_s20, 3 }
  0x2f   : > { %s267_s23 = scalar_lea.vmem %s3579_s0, %s2447_s21 }
  0x30   : > { %v301_v0 = vld [vmem:[%s267_s23] sm:$0xff]  ;;  %v303_v1 = vld [vmem:[%s267_s23 + $0x18] sm:$0xff]  ;;  %v305_v2 = vld [vmem:[%s267_s23 + $0x30] sm:$0xff] }
  0x31   : > { %302 = vst [vmem:[%s263_s14] sm:$0xff] %v301_v0  ;;  %304 = vst [vmem:[%s263_s14 + $0x8] sm:$0xff] %v303_v1  ;;  %v307_v3 = vld [vmem:[%s267_s23 + $0x48] sm:$0xff] }
  0x32   : > { %306 = vst [vmem:[%s263_s14 + $0x10] sm:$0xff] %v305_v2  ;;  %308 = vst [vmem:[%s263_s14 + $0x18] sm:$0xff] %v307_v3 }
  0x33 PF: > { %314 = sbr.rel (!%p2921_p10) target bundleno = 63 (0x3f), region = 74  ;;  %s316_s18 = sand.u32 (%p2921_p10), 1, %s2752_s26  }
  0x34   : > { %s2352_s7 = smul.u32 (%p2921_p10), 12, %s2776_s9  ;;  %s2448_s17 = sshll.u32 (%p2921_p10), %s316_s18, 5 }
  0x35   : > { %s3580_s1 = sld [smem:[#allocation10_spill]] (%p2921_p10)  ;;  %s318_s14 = scalar_lea.vmem (%p2921_p10), [#allocation3], %s2448_s17 }
  0x36   : > { %s2353_s20 = sadd.s32 (%p2921_p10), %s2772_s8, %s2352_s7 }
  0x37   : > { %s2449_s21 = sshll.u32 (%p2921_p10), %s2353_s20, 3 }
  0x3b   : > { %s2355_s15 = scalar_lea.vmem %s3580_s1, %s2449_s21 }
  0x3c   : > { %v2450_v4 = vld [vmem:[%s2355_s15 + $0x8] sm:$0xff]  ;;  %v2451_v5 = vld [vmem:[%s2355_s15 + $0x20] sm:$0xff]  ;;  %v2452_v6 = vld [vmem:[%s2355_s15 + $0x38] sm:$0xff] }
  0x3d   : > { %358 = vst [vmem:[%s318_s14] sm:$0xff] %v2450_v4  ;;  %360 = vst [vmem:[%s318_s14 + $0x8] sm:$0xff] %v2451_v5  ;;  %v2453_v7 = vld [vmem:[%s2355_s15 + $0x50] sm:$0xff] }
  0x3e   : > { %362 = vst [vmem:[%s318_s14 + $0x10] sm:$0xff] %v2452_v6  ;;  %364 = vst [vmem:[%s318_s14 + $0x18] sm:$0xff] %v2453_v7 }
  0x3f PF: > { %p2454_p1 = scmp.ge.s32.totalorder %s2780_s10, 1  ;;  %p380_p2 = scmp.lt.s32.totalorder %s2780_s10, 5 }
  0x41   : > { %p381_p3 = pnand %p2454_p1, %p380_p2 }
  0x42   : > { %s2962_s6 = sand.u32 (!%p381_p3), 1, %s2756_s27   ;;  %s394_s18 = sand.u32 (!%p381_p3), 1, %s2748_s25   ;;  %v2782_v8 = vmov (!%p381_p3), 0.0   ;;  %vm1625_vm0 = vcmask (!%p381_p3), 1045504   ;;  %vm1038_vm1 = vcmask (!%p381_p3), 1046528   ;;  %v459_v45 = vlaneseq (!%p381_p3) }
  0x43   : > { %384 = sbr.rel (%p381_p3) target bundleno = 862 (0x35e), region = 116  ;;  %s2455_s23 = sshll.u32 (!%p381_p3), %s2962_s6, 5  ;;  %2517 = vmatprep.subr.mxu1 (!%p381_p3), %v2782_v8  ;;  %2512 = vmatprep.subr.mxu0 (!%p381_p3), %v2782_v8  ;;  %v2785_v43 = vmov (!%p381_p3), 1983009808   ;;  %v2786_v48 = vmov (!%p381_p3), 1934713408  }
  0x44   : > { %s389_s7 = scalar_lea.vmem (!%p381_p3), [#allocation2], %s2455_s23  ;;  %s2456_s17 = sshll.u32 (!%p381_p3), %s394_s18, 5  ;;  %v457_v44 = vunpack.c.l.s4 (!%p381_p3), %v2785_v43  ;;  %v460_v47 = vshrl.u32 (!%p381_p3), %v459_v45, 7  ;;  %v489_v49 = vunpack.c.l.s4 (!%p381_p3), %v2786_v48  ;;  %vm2794_vm2 = vmmov (!%p381_p3), 0  }
  0x45   : > { %v2968_v9 = vld [vmem:[%s389_s7 + $0x10] sm:$0xff] (!%p381_p3)  ;;  %v2970_v10 = vld [vmem:[%s389_s7] sm:$0xff] (!%p381_p3)  ;;  %s2783_s20 = smov (!%p381_p3), 127   ;;  %v2976_v11 = vld [vmem:[%s389_s7 + $0x18] sm:$0xff] (!%p381_p3)  ;;  %s396_s25 = scalar_lea.vmem (!%p381_p3), [#allocation3], %s2456_s17  ;;  %2519 = vmatprep.mubr.msk.f32.mxu1 (!%p381_p3), %vm2794_vm2, %v2782_v8  ;;  %2514 = vmatprep.mubr.msk.f32.mxu0 (!%p381_p3), %vm2794_vm2, %v2782_v8  ;;  %vm550_vm3 = vcmask (!%p381_p3), 130048  }
  0x46   : > { %573 = vrot.lane.b32.xlu1 (!%p381_p3), %v2968_v9, %s2783_s20  ;;  %569 = vrot.lane.b32.xlu0 (!%p381_p3), %v2970_v10, %s2783_s20  ;;  %v2978_v12 = vld [vmem:[%s389_s7 + $0x8] sm:$0xff] (!%p381_p3)  ;;  %v450_v14 = vld [vmem:[%s396_s25] sm:$0xff] (!%p381_p3)  ;;  %v1635_v18 = vrot.slane (!%p381_p3), %v2976_v11, 2  ;;  %v1626_v20 = vrot.slane (!%p381_p3), %v2970_v10, 2  ;;  %v1632_v23 = vrot.slane (!%p381_p3), %v2968_v9, 2  ;;  %s2784_s21 = smov (!%p381_p3), 126   ;;  %v458_v46 = vunpack.c.0.s8 (!%p381_p3), %v457_v44 }
  0x47   : > { %v451_v13 = vld [vmem:[%s396_s25 + $0x8] sm:$0xff] (!%p381_p3)  ;;  %v453_v15 = vld [vmem:[%s396_s25 + $0x18] sm:$0xff] (!%p381_p3)  ;;  %v1629_v16 = vrot.slane (!%p381_p3), %v2978_v12, 2  ;;  %v452_v19 = vld [vmem:[%s396_s25 + $0x10] sm:$0xff] (!%p381_p3)  ;;  %v1627_v21 = vrot.slane (!%p381_p3), %v450_v14, 2  ;;  %v1042_v31 = vrot.slane (!%p381_p3), %v2978_v12, 1  ;;  %v454_v51 = vcombine.low (!%p381_p3), %v2970_v10, %v2968_v9 }
  0x48   : > { %v1630_v17 = vrot.slane (!%p381_p3), %v451_v13, 2  ;;  %v1636_v22 = vrot.slane (!%p381_p3), %v453_v15, 2  ;;  %v1633_v24 = vrot.slane (!%p381_p3), %v452_v19, 2  ;;  %v1043_v32 = vrot.slane (!%p381_p3), %v451_v13, 1  ;;  %s2787_s22 = smov (!%p381_p3), 16   ;;  %s2788_s12 = smov (!%p381_p3), 64  }
  0x49   : > { %v2995_v27 = vsel (!%p381_p3), %vm1625_vm0, %v1626_v20, %v1627_v21  ;;  %v1039_v33 = vrot.slane (!%p381_p3), %v2970_v10, 1  ;;  %v1040_v34 = vrot.slane (!%p381_p3), %v450_v14, 1  ;;  %v1048_v35 = vrot.slane (!%p381_p3), %v2976_v11, 1  ;;  %s2789_s15 = smov (!%p381_p3), 32   ;;  %s2790_s14 = smov (!%p381_p3), 48  }
  0x4a   : > { %575 = vrot.lane.b32.xlu1 %v2976_v11, %s2783_s20  ;;  %571 = vrot.lane.b32.xlu0 %v2978_v12, %s2783_s20  ;;  %v2989_v25 = vsel %vm1625_vm0, %v1629_v16, %v1630_v17  ;;  %v2992_v26 = vsel %vm1625_vm0, %v1635_v18, %v1636_v22  ;;  %v3000_v29 = vsel %vm1625_vm0, %v1632_v23, %v1633_v24  ;;  %v1045_v36 = vrot.slane %v2968_v9, 1  ;;  %s2791_s23 = smov 112   ;;  %s2792_s18 = smov 80  }
  0x4b   : > { %v1659_v28 = vcombine.high %v2989_v25, %v2992_v26  ;;  %v1643_v30 = vcombine.high %v2995_v27, %v3000_v29  ;;  %v1044_v37 = vsel %vm1038_vm1, %v1042_v31, %v1043_v32  ;;  %v1041_v38 = vsel %vm1038_vm1, %v1039_v33, %v1040_v34  ;;  %s2793_s7 = smov 96   ;;  %s3581_s2 = sld [smem:[#allocation11_spill]] }
  0x4c   : > { %v1049_v39 = vrot.slane %v453_v15, 1  ;;  %v1046_v40 = vrot.slane %v452_v19, 1  ;;  %v3022_v50 = vsub.s32 %v458_v46, %v460_v47  ;;  %v470_v52 = vcombine.low %v2978_v12, %v2976_v11  ;;  %s3582_s3 = sld [smem:[#allocation12_spill]]  ;;  %p438_p4 = scmp.lt.s32.totalorder %s2768_s30, 1 }
  0x4d   : > { %v490_v55 = vunpack.c.0.s8 %v489_v49  ;;  %v455_v56 = vcombine.high %v2970_v10, %v2968_v9  ;;  %v471_v59 = vcombine.high %v2978_v12, %v2976_v11  ;;  %v1658_v34 = vcombine.low %v2989_v25, %v2992_v26  ;;  %p440_p5 = scmp.lt.s32.totalorder %s2764_s29, 1  ;;  %s3583_s17 = sld [smem:[#allocation13_spill]] }
  0x4e   : > { %842 = vrot.lane.b32.xlu1 %v2978_v12, %s2784_s21  ;;  %840 = vrot.lane.b32.xlu0 %v2970_v10, %s2784_s21  ;;  %v1050_v41 = vsel %vm1038_vm1, %v1048_v35, %v1049_v39  ;;  %v1047_v42 = vsel %vm1038_vm1, %v1045_v36, %v1046_v40  ;;  %v462_v57 = vrot.slane %v454_v51, %v3022_v50  ;;  %vm552_vm4 = vcmask 261120   ;;  %s439_s25 = scalar_select %p438_p4, %s2768_s30, 1 }
  0x4f   : > { %v1071_v53 = vcombine.low %v1044_v37, %v1050_v41  ;;  %v1055_v54 = vcombine.low %v1041_v38, %v1047_v42  ;;  %v478_v58 = vrot.slane %v470_v52, %v3022_v50  ;;  %v3042_v62 = vsub.s32 %v490_v55, %v460_v47 }
  0x50   : > { %v469_v0 = vrot.slane %v455_v56, %v3022_v50  ;;  %v485_v1 = vrot.slane %v471_v59, %v3022_v50  ;;  %v1072_v5 = vcombine.high %v1044_v37, %v1050_v41  ;;  %v1056_v6 = vcombine.high %v1041_v38, %v1047_v42 }
  0x51   : > { %v1079_v60 = vrot.slane %v1071_v53, %v3022_v50  ;;  %v1063_v61 = vrot.slane %v1055_v54, %v3022_v50  ;;  %v486_v63 = vcombine.low %v462_v57, %v478_v58  ;;  %v487_v7 = vcombine.high %v462_v57, %v478_v58 }
  0x52   : > { %846 = vrot.lane.b32.xlu1 %v2976_v11, %s2784_s21  ;;  %844 = vrot.lane.b32.xlu0 %v2968_v9, %s2784_s21  ;;  %v502_v4 = vcombine.low %v469_v0, %v485_v1  ;;  %v503_v12 = vcombine.high %v469_v0, %v485_v1  ;;  %v3071_v13 = vrot.slane %v1659_v28, %v3022_v50  ;;  %vm554_vm5 = vcmask 392192  }
  0x53   : > { %v1087_v2 = vcombine.low %v1063_v61, %v1079_v60  ;;  %v3055_v3 = vrot.slane %v486_v63, %v3042_v62  ;;  %v3077_v14 = vrot.slane %v1643_v30, %v3022_v50  ;;  %v1088_v15 = vcombine.high %v1063_v61, %v1079_v60 }
  0x54   : > { %v510_v11 = vrot.slane %v502_v4, %v3042_v62  ;;  %v1070_v16 = vrot.slane %v1056_v6, %v3022_v50  ;;  %v1086_v17 = vrot.slane %v1072_v5, %v3022_v50  ;;  %v501_v18 = vrot.slane %v487_v7, %v3042_v62 }
  0x55   : > { %v3058_v9 = vrot.slane %v1087_v2, %v3042_v62  ;;  %v518_v10 = vcombine.high %v3055_v3, %v2782_v8  ;;  %v517_v20 = vrot.slane %v503_v12, %v3042_v62  ;;  %v1102_v21 = vrot.slane %v1088_v15, %v3042_v62 }
  0x56   : > { %1239 = vrot.lane.b32.xlu1 %v1044_v37, %s2783_s20  ;;  %1237 = vrot.lane.b32.xlu0 %v1041_v38, %s2783_s20  ;;  %v1103_v22 = vcombine.low %v1070_v16, %v1086_v17  ;;  %v519_v23 = vcombine.high %v501_v18, %v2782_v8  ;;  %v1690_v28 = vcombine.low %v3077_v14, %v3071_v13  ;;  %vm556_vm6 = vcmask 523264  }
  0x57   : > { %v1119_v19 = vcombine.high %v3058_v9, %v2782_v8  ;;  %v521_v24 = vcombine.high %v517_v20, %v2782_v8  ;;  %v1120_v30 = vcombine.high %v1102_v21, %v2782_v8  ;;  %v520_v31 = vcombine.high %v510_v11, %v2782_v8 }
  0x58   : > { %v1111_v32 = vrot.slane %v1103_v22, %v3042_v62  ;;  %v1104_v33 = vcombine.high %v1070_v16, %v1086_v17  ;;  %v1642_v35 = vcombine.low %v2995_v27, %v3000_v29  ;;  %vm558_vm7 = vcmask 654336  }
  0x59   : > { %vm560_vm8 = vcmask 785408   ;;  %vm562_vm9 = vcmask 916480   ;;  %vm690_vm10 = vcmask 1043456   ;;  %vm686_vm11 = vcmask 31744  }
  0x5a   : > { %1243 = vrot.lane.b32.xlu1 %v1050_v41, %s2783_s20  ;;  %1241 = vrot.lane.b32.xlu0 %v1047_v42, %s2783_s20  ;;  %v1121_v36 = vcombine.high %v1111_v32, %v2782_v8  ;;  %v1650_v39 = vrot.slane %v1642_v35, %v3022_v50  ;;  %vm2228_vm12 = vcmask 64512  }
  0x5e   : > { %1433 = vrot.lane.b32.xlu1 %v1044_v37, %s2784_s21  ;;  %1431 = vrot.lane.b32.xlu0 %v1041_v38, %s2784_s21  ;;  %v1118_v37 = vrot.slane %v1104_v33, %v3042_v62  ;;  %v1666_v38 = vrot.slane %v1658_v34, %v3022_v50 }
  0x62   : > { %1437 = vrot.lane.b32.xlu1 %v1050_v41, %s2784_s21  ;;  %1435 = vrot.lane.b32.xlu0 %v1047_v42, %s2784_s21 }
  0x66   : > { %1826 = vrot.lane.b32.xlu1 %v2989_v25, %s2783_s20  ;;  %1824 = vrot.lane.b32.xlu0 %v2995_v27, %s2783_s20 }
  0x6a   : > { %1830 = vrot.lane.b32.xlu1 %v2992_v26, %s2783_s20  ;;  %1828 = vrot.lane.b32.xlu0 %v3000_v29, %s2783_s20 }
  0x6e   : > { %2020 = vrot.lane.b32.xlu1 %v2989_v25, %s2784_s21  ;;  %2018 = vrot.lane.b32.xlu0 %v2995_v27, %s2784_s21  ;;  %v1122_v25 = vcombine.high %v1118_v37, %v2782_v8  ;;  %v1675_v27 = vcombine.high %v1650_v39, %v1666_v38 }
  0x70   : > { %v1689_v40 = vrot.slane %v1675_v27, %v3042_v62 }
  0x72   : > { %2024 = vrot.lane.b32.xlu1 %v2992_v26, %s2784_s21  ;;  %2022 = vrot.lane.b32.xlu0 %v3000_v29, %s2784_s21  ;;  %v1691_v26 = vcombine.high %v3077_v14, %v3071_v13  ;;  %v1674_v29 = vcombine.low %v1650_v39, %v1666_v38  ;;  %v1707_v43 = vcombine.high %v1689_v40, %v2782_v8  ;;  %v2468_v13 = vld [vmem:[%s3581_s2 + $0x18] sm:$0xff]  ;;  %s441_s21 = scalar_select %p440_p5, %s2764_s29, 1 }
  0x74   : > { %v3119_v41 = vrot.slane %v1674_v29, %v3042_v62 }
  0x76   : > { %523 = vrot.lane.b32.xlu0 %v518_v10, %s2787_s22  ;;  %535 = vrot.lane.b32.xlu1 %v510_v11, %s2788_s12  ;;  %v1706_v42 = vcombine.high %v3119_v41, %v2782_v8 }
  0x7a   : > { %527 = vrot.lane.b32.xlu0 %v501_v18, %s2789_s15  ;;  %1124 = vrot.lane.b32.xlu1 %v1119_v19, %s2787_s22 }
  0x7e   : > { %531 = vrot.lane.b32.xlu0 %v519_v23, %s2790_s14  ;;  %547 = vrot.lane.b32.xlu1 %v521_v24, %s2791_s23 }
  0x82   : > { %539 = vrot.lane.b32.xlu0 %v520_v31, %s2792_s18  ;;  %1132 = vrot.lane.b32.xlu1 %v1120_v30, %s2790_s14 }
  0x86   : > { %543 = vrot.lane.b32.xlu0 %v517_v20, %s2793_s7  ;;  %1140 = vrot.lane.b32.xlu1 %v1121_v36, %s2792_s18 }
  0x8a   : > { %1128 = vrot.lane.b32.xlu0 %v1102_v21, %s2789_s15  ;;  %1148 = vrot.lane.b32.xlu1 %v1122_v25, %s2791_s23 }
  0x8e   : > { %1136 = vrot.lane.b32.xlu0 %v1111_v32, %s2788_s12  ;;  %1715 = vrot.lane.b32.xlu1 %v1689_v40, %s2789_s15 }
  0x92   : > { %1144 = vrot.lane.b32.xlu0 %v1118_v37, %s2793_s7 }
  0x96   : > { %1711 = vrot.lane.b32.xlu0 %v1706_v42, %s2787_s22 }
  0x9a   : > { %1719 = vrot.lane.b32.xlu0 %v1707_v43, %s2790_s14 }
  0xb8   : > { %v574_v44 = vpop.permute.xlu1 %573  ;;  %v570_v45 = vpop.permute.xlu0 %569 }
  0xb9   : > { %v581_v46 = vcombine.low %v570_v45, %v574_v44  ;;  %v582_v47 = vcombine.high %v570_v45, %v574_v44 }
  0xbb   : > { %v589_v53 = vrot.slane %v581_v46, %v3022_v50  ;;  %v596_v54 = vrot.slane %v582_v47, %v3022_v50 }
  0xbc   : > { %v576_v48 = vpop.permute.xlu1 %575  ;;  %v572_v49 = vpop.permute.xlu0 %571 }
  0xbd   : > { %v597_v51 = vcombine.low %v572_v49, %v576_v48  ;;  %v598_v52 = vcombine.high %v572_v49, %v576_v48 }
  0xbf   : > { %v605_v55 = vrot.slane %v597_v51, %v3022_v50  ;;  %v612_v56 = vrot.slane %v598_v52, %v3022_v50 }
  0xc0   : > { %v843_v57 = vpop.permute.xlu1 %842  ;;  %v841_v58 = vpop.permute.xlu0 %840 }
  0xc1   : > { %v613_v59 = vcombine.low %v589_v53, %v605_v55  ;;  %v614_v60 = vcombine.high %v589_v53, %v605_v55  ;;  %v630_v61 = vcombine.high %v596_v54, %v612_v56  ;;  %v629_v63 = vcombine.low %v596_v54, %v612_v56 }
  0xc3   : > { %v628_v0 = vrot.slane %v614_v60, %v3042_v62  ;;  %v3138_v1 = vrot.slane %v630_v61, %v3042_v62  ;;  %v3141_v5 = vrot.slane %v613_v59, %v3042_v62  ;;  %v637_v12 = vrot.slane %v629_v63, %v3042_v62 }
  0xc4   : > { %v847_v2 = vpop.permute.xlu1 %846  ;;  %v845_v4 = vpop.permute.xlu0 %844 }
  0xc5   : > { %v868_v6 = vcombine.low %v843_v57, %v847_v2  ;;  %v869_v7 = vcombine.high %v843_v57, %v847_v2  ;;  %v852_v10 = vcombine.low %v841_v58, %v845_v4  ;;  %v853_v11 = vcombine.high %v841_v58, %v845_v4  ;;  %654 = vrot.lane.b32.xlu1 %v628_v0, %s2789_s15 }
  0xc6   : > { %670 = vrot.lane.b32.xlu0 %v3138_v1, %s2793_s7  ;;  %v645_v19 = vcombine.high %v3141_v5, %v2782_v8  ;;  %v646_v51 = vcombine.high %v628_v0, %v2782_v8  ;;  %v647_v63 = vcombine.high %v637_v12, %v2782_v8 }
  0xc7   : > { %v876_v15 = vrot.slane %v868_v6, %v3022_v50  ;;  %v883_v16 = vrot.slane %v869_v7, %v3022_v50  ;;  %v860_v17 = vrot.slane %v852_v10, %v3022_v50  ;;  %v867_v18 = vrot.slane %v853_v11, %v3022_v50 }
  0xc8   : > { %v1240_v20 = vpop.permute.xlu1 %1239  ;;  %v1238_v21 = vpop.permute.xlu0 %1237 }
  0xc9   : > { %v884_v22 = vcombine.low %v860_v17, %v876_v15  ;;  %v885_v23 = vcombine.high %v860_v17, %v876_v15  ;;  %662 = vrot.lane.b32.xlu1 %v637_v12, %s2788_s12  ;;  %v900_v24 = vcombine.low %v867_v18, %v883_v16  ;;  %v901_v35 = vcombine.high %v867_v18, %v883_v16 }
  0xca   : > { %650 = vrot.lane.b32.xlu0 %v645_v19, %s2787_s22  ;;  %v648_v12 = vcombine.high %v3138_v1, %v2782_v8 }
  0xcb   : > { %v899_v30 = vrot.slane %v885_v23, %v3042_v62  ;;  %v3157_v31 = vrot.slane %v884_v22, %v3042_v62  ;;  %v908_v36 = vrot.slane %v900_v24, %v3042_v62  ;;  %v915_v25 = vrot.slane %v901_v35, %v3042_v62 }
  0xcc   : > { %v1244_v32 = vpop.permute.xlu1 %1243  ;;  %v1242_v33 = vpop.permute.xlu0 %1241 }
  0xcd   : > { %925 = vrot.lane.b32.xlu1 %v899_v30, %s2789_s15  ;;  %v916_v34 = vcombine.high %v3157_v31, %v2782_v8  ;;  %v917_v39 = vcombine.high %v899_v30, %v2782_v8  ;;  %v1265_v45 = vcombine.low %v1240_v20, %v1244_v32  ;;  %v1249_v46 = vcombine.low %v1238_v21, %v1242_v33 }
  0xce   : > { %v918_v47 = vcombine.high %v908_v36, %v2782_v8  ;;  %v919_v59 = vcombine.high %v915_v25, %v2782_v8  ;;  %v1266_v60 = vcombine.high %v1240_v20, %v1244_v32  ;;  %v1250_v61 = vcombine.high %v1238_v21, %v1242_v33 }
  0xcf   : > { %921 = vrot.lane.b32.xlu0 %v916_v34, %s2787_s22  ;;  %v1273_v57 = vrot.slane %v1265_v45, %v3022_v50  ;;  %v1257_v58 = vrot.slane %v1249_v46, %v3022_v50 }
  0xd0   : > { %v1434_v37 = vpop.permute.xlu1 %1433  ;;  %v1432_v38 = vpop.permute.xlu0 %1431  ;;  %v1280_v10 = vrot.slane %v1266_v60, %v3022_v50  ;;  %v1264_v11 = vrot.slane %v1250_v61, %v3022_v50 }
  0xd1   : > { %933 = vrot.lane.b32.xlu1 %v908_v36, %s2788_s12  ;;  %v1281_v7 = vcombine.low %v1257_v58, %v1273_v57  ;;  %v1282_v15 = vcombine.high %v1257_v58, %v1273_v57 }
  0xd2   : > { %v1297_v20 = vcombine.low %v1264_v11, %v1280_v10  ;;  %v1298_v23 = vcombine.high %v1264_v11, %v1280_v10 }
  0xd3   : > { %929 = vrot.lane.b32.xlu0 %v917_v39, %s2790_s14  ;;  %v3210_v19 = vrot.slane %v1281_v7, %v3042_v62  ;;  %v1296_v21 = vrot.slane %v1282_v15, %v3042_v62  ;;  %v1698_v15 = vrot.slane %v1690_v28, %v3042_v62  ;;  %v564_v28 = vld [vmem:[%s3581_s2] sm:$0xff] }
  0xd4   : > { %v1438_v27 = vpop.permute.xlu1 %1437  ;;  %v1436_v29 = vpop.permute.xlu0 %1435  ;;  %v1305_v32 = vrot.slane %v1297_v20, %v3042_v62  ;;  %v1312_v36 = vrot.slane %v1298_v23, %v3042_v62 }
  0xd5   : > { %941 = vrot.lane.b32.xlu1 %v915_v25, %s2793_s7  ;;  %v1459_v40 = vcombine.low %v1434_v37, %v1438_v27  ;;  %v1460_v42 = vcombine.high %v1434_v37, %v1438_v27  ;;  %v1443_v43 = vcombine.low %v1432_v38, %v1436_v29  ;;  %v1444_v44 = vcombine.high %v1432_v38, %v1436_v29 }
  0xd6   : > { %v1313_v24 = vcombine.high %v3210_v19, %v2782_v8  ;;  %v1314_v35 = vcombine.high %v1296_v21, %v2782_v8 }
  0xd7   : > { %v1467_v48 = vrot.slane %v1459_v40, %v3022_v50  ;;  %v1451_v49 = vrot.slane %v1443_v43, %v3022_v50  ;;  %v3174_v52 = vrot.slane %v1460_v42, %v3022_v50  ;;  %v3177_v53 = vrot.slane %v1444_v44, %v3022_v50  ;;  %937 = vrot.lane.b32.xlu0 %v918_v47, %s2792_s18 }
  0xd8   : > { %v3180_v54 = vpop.permute.xlu1 %1826  ;;  %v3182_v55 = vpop.permute.xlu0 %1824  ;;  %v1315_v40 = vcombine.high %v1305_v32, %v2782_v8 }
  0xd9   : > { %v1476_v56 = vcombine.high %v1451_v49, %v1467_v48  ;;  %658 = vrot.lane.b32.xlu1 %v646_v51, %s2790_s14  ;;  %v1491_v0 = vcombine.low %v3177_v53, %v3174_v52  ;;  %v1475_v30 = vcombine.low %v1451_v49, %v1467_v48  ;;  %v1492_v51 = vcombine.high %v3177_v53, %v3174_v52 }
  0xdb   : > { %945 = vrot.lane.b32.xlu0 %v919_v59, %s2791_s23  ;;  %v1490_v2 = vrot.slane %v1476_v56, %v3042_v62  ;;  %v1499_v16 = vrot.slane %v1491_v0, %v3042_v62  ;;  %v3231_v39 = vrot.slane %v1475_v30, %v3042_v62  ;;  %v1316_v56 = vcombine.high %v1312_v36, %v2782_v8 }
  0xdc   : > { %v3193_v4 = vpop.permute.xlu1 %1830  ;;  %v3195_v6 = vpop.permute.xlu0 %1828  ;;  %v1506_v53 = vrot.slane %v1492_v51, %v3042_v62 }
  0xdd   : > { %666 = vrot.lane.b32.xlu1 %v647_v63, %s2792_s18  ;;  %v1852_v37 = vcombine.low %v3180_v54, %v3193_v4  ;;  %v1836_v38 = vcombine.low %v3182_v55, %v3195_v6  ;;  %v1507_v45 = vcombine.high %v3231_v39, %v2782_v8  ;;  %v1508_v58 = vcombine.high %v1490_v2, %v2782_v8 }
  0xde   : > { %v1837_v20 = vcombine.high %v3182_v55, %v3195_v6  ;;  %v1708_v55 = vcombine.high %v1698_v15, %v2782_v8 }
  0xdf   : > { %1516 = vrot.lane.b32.xlu0 %v1490_v2, %s2789_s15  ;;  %v1860_v43 = vrot.slane %v1852_v37, %v3022_v50  ;;  %v1844_v44 = vrot.slane %v1836_v38, %v3022_v50  ;;  %v1509_v2 = vcombine.high %v1499_v16, %v2782_v8 }
  0xe0   : > { %v3204_v17 = vpop.permute.xlu1 %2020  ;;  %v3206_v18 = vpop.permute.xlu0 %2018 }
  0xe1   : > { %674 = vrot.lane.b32.xlu1 %v648_v12, %s2791_s23  ;;  %v1868_v57 = vcombine.low %v1844_v44, %v1860_v43  ;;  %v1869_v52 = vcombine.high %v1844_v44, %v1860_v43 }
  0xe3   : > { %1524 = vrot.lane.b32.xlu0 %v1499_v16, %s2788_s12  ;;  %v3267_v7 = vrot.slane %v1868_v57, %v3042_v62  ;;  %v1853_v16 = vcombine.high %v3180_v54, %v3193_v4  ;;  %v1883_v23 = vrot.slane %v1869_v52, %v3042_v62 }
  0xe4   : > { %v3214_v22 = vpop.permute.xlu1 %2024  ;;  %v3216_v1 = vpop.permute.xlu0 %2022 }
  0xe5   : > { %1322 = vrot.lane.b32.xlu1 %v1296_v21, %s2789_s15  ;;  %v2030_v46 = vcombine.low %v3206_v18, %v3216_v1  ;;  %v1900_v54 = vcombine.high %v3267_v7, %v2782_v8  ;;  %v1867_v6 = vrot.slane %v1853_v16, %v3022_v50  ;;  %v1901_v14 = vcombine.high %v1883_v23, %v2782_v8 }
  0xe7   : > { %1318 = vrot.lane.b32.xlu0 %v1313_v24, %s2787_s22  ;;  %v3260_v61 = vrot.slane %v2030_v46, %v3022_v50  ;;  %v2031_v46 = vcombine.high %v3206_v18, %v3216_v1 }
  0xe8   : > { %v524_v33 = vpop.permute.xlu0 %523  ;;  %v536_v34 = vpop.permute.xlu1 %535 }
  0xe9   : > { %1330 = vrot.lane.b32.xlu1 %v1305_v32, %s2788_s12  ;;  %v551_v25 = vsel %vm550_vm3, %v3055_v3, %v524_v33  ;;  %v2046_v3 = vcombine.low %v3204_v17, %v3214_v22  ;;  %v1851_v32 = vrot.slane %v1837_v20, %v3022_v50 }
  0xeb   : > { %1326 = vrot.lane.b32.xlu0 %v1314_v35, %s2790_s14  ;;  %v3257_v60 = vrot.slane %v2046_v3, %v3022_v50  ;;  %v1884_v38 = vcombine.low %v1851_v32, %v1867_v6  ;;  %v2047_v3 = vcombine.high %v3204_v17, %v3214_v22 }
  0xec   : > { %v528_v27 = vpop.permute.xlu0 %527  ;;  %v1125_v29 = vpop.permute.xlu1 %1124 }
  0xed   : > { %1338 = vrot.lane.b32.xlu1 %v1312_v36, %s2793_s7  ;;  %v553_v42 = vsel %vm552_vm4, %v551_v25, %v528_v27  ;;  %v2062_v11 = vcombine.low %v3260_v61, %v3257_v60  ;;  %v1151_v24 = vsel %vm550_vm3, %v3058_v9, %v1125_v29  ;;  %v1510_v29 = vcombine.high %v1506_v53, %v2782_v8 }
  0xee   : > { %v1892_v44 = vrot.slane %v1884_v38, %v3042_v62  ;;  %v2061_v1 = vrot.slane %v2047_v3, %v3022_v50 }
  0xef   : > { %1334 = vrot.lane.b32.xlu0 %v1315_v40, %s2792_s18  ;;  %v3295_v4 = vrot.slane %v2062_v11, %v3042_v62 }
  0xf0   : > { %v532_v47 = vpop.permute.xlu0 %531  ;;  %v548_v49 = vpop.permute.xlu1 %547 }
  0xf1   : > { %1512 = vrot.lane.b32.xlu1 %v1507_v45, %s2787_s22  ;;  %v555_v48 = vsel %vm554_vm5, %v553_v42, %v532_v47  ;;  %v2094_v36 = vcombine.high %v3295_v4, %v2782_v8  ;;  %v1705_v42 = vrot.slane %v1691_v26, %v3042_v62  ;;  %v2063_v47 = vcombine.high %v3260_v61, %v3257_v60 }
  0xf2   : > { %v557_v59 = vsel %vm556_vm6, %v555_v48, %v536_v34  ;;  %v1885_v61 = vcombine.high %v1851_v32, %v1867_v6 }
  0xf3   : > { %1342 = vrot.lane.b32.xlu0 %v1316_v56, %s2791_s23  ;;  %v1709_v17 = vcombine.high %v1705_v42, %v2782_v8  ;;  %v2077_v51 = vrot.slane %v2063_v47, %v3042_v62  ;;  %v2465_v47 = vld [vmem:[%s3581_s2 + $0x10] sm:$0xff] }
  0xf4   : > { %v540_v63 = vpop.permute.xlu0 %539  ;;  %v1133_v10 = vpop.permute.xlu1 %1132 }
  0xf5   : > { %1520 = vrot.lane.b32.xlu1 %v1508_v58, %s2790_s14  ;;  %v559_v0 = vsel %vm558_vm7, %v557_v59, %v540_v63  ;;  %v2095_v59 = vcombine.high %v2077_v51, %v2782_v8  ;;  %v1902_v63 = vcombine.high %v1892_v44, %v2782_v8 }
  0xf7   : > { %1532 = vrot.lane.b32.xlu0 %v1506_v53, %s2793_s7 }
  0xf8   : > { %v544_v12 = vpop.permute.xlu0 %543  ;;  %v1141_v34 = vpop.permute.xlu1 %1140 }
  0xf9   : > { %1528 = vrot.lane.b32.xlu1 %v1509_v2, %s2792_s18  ;;  %v561_v21 = vsel %vm560_vm8, %v559_v0, %v544_v12  ;;  %v1899_v0 = vrot.slane %v1885_v61, %v3042_v62  ;;  %v2795_v2 = vmov 0  }
  0xfa   : > { %v563_v30 = vsel %vm562_vm9, %v561_v21, %v548_v49  ;;  %v2045_v49 = vrot.slane %v2031_v46, %v3022_v50  ;;  %2664 = vset.pattern.permute.xlu1 %v2795_v2  ;;  %2665 = vset.pattern.permute.xlu0 %v2795_v2 }
  0xfb   : > { %2518 = vmatpush3.msk.msra.mxu1 %vm690_vm10, %v563_v30  ;;  %1909 = vrot.lane.b32.xlu0 %v1883_v23, %s2789_s15  ;;  %v1903_v11 = vcombine.high %v1899_v0, %v2782_v8 }
  0xfc   : > { %v1129_v9 = vpop.permute.xlu0 %1128  ;;  %2527 = vmatprep.subr.mxu1 %v2782_v8  ;;  %2520 = vmatmul.mubr.msk.f32.vlgmr.msra.gmra.mrb[0].mxu1 %vm686_vm11, %v564_v28  ;;  %v1149_v40 = vpop.permute.xlu1 %1148  ;;  %v2078_v58 = vcombine.low %v2045_v49, %v2061_v1  ;;  %v2079_v50 = vcombine.high %v2045_v49, %v2061_v1 }
  0xfd   : > { %1905 = vrot.lane.b32.xlu1 %v1900_v54, %s2787_s22  ;;  %v1152_v33 = vsel %vm552_vm4, %v1151_v24, %v1129_v9  ;;  %2529 = vmatprep.mubr.msk.f32.mxu1 %vm2794_vm2, %v2782_v8 }
  0xfe   : > { %v1153_v35 = vsel %vm554_vm5, %v1152_v33, %v1133_v10  ;;  %v2086_v60 = vrot.slane %v2078_v58, %v3042_v62  ;;  %v2093_v53 = vrot.slane %v2079_v50, %v3042_v62  ;;  %v2212_v62 = vld [vmem:[%s3582_s3] sm:$0xff] }
  0xff   : > { %1727 = vrot.lane.b32.xlu0 %v1708_v55, %s2792_s18 }
 0x100   : > { %v1137_v37 = vpop.permute.xlu0 %1136  ;;  %v1716_v26 = vpop.permute.xlu1 %1715  ;;  %v2096_v52 = vcombine.high %v2086_v60, %v2782_v8  ;;  %v2097_v10 = vcombine.high %v2093_v53, %v2782_v8 }
 0x101   : > { %1723 = vrot.lane.b32.xlu1 %v1698_v15, %s2788_s12  ;;  %v1154_v25 = vsel %vm556_vm6, %v1153_v35, %v1137_v37 }
 0x102   : > { %v1155_v27 = vsel %vm558_vm7, %v1154_v25, %v1141_v34 }
 0x103   : > { %2099 = vrot.lane.b32.xlu0 %v2094_v36, %s2787_s22  ;;  %s2458_s22 = sshll.u32 %s439_s25, 1 }
 0x104   : > { %v1145_v43 = vpop.permute.xlu0 %1144 }
 0x105   : > { %1536 = vrot.lane.b32.xlu1 %v1510_v29, %s2791_s23  ;;  %v1156_v45 = vsel %vm560_vm8, %v1155_v27, %v1145_v43 }
 0x106   : > { %v1157_v48 = vsel %vm562_vm9, %v1156_v45, %v1149_v40 }
 0x107   : > { %2528 = vmatpush3.msk.msra.mxu1 %vm690_vm10, %v1157_v48  ;;  %1917 = vrot.lane.b32.xlu0 %v1892_v44, %s2788_s12 }
 0x108   : > { %v1712_v22 = vpop.permute.xlu0 %1711  ;;  %2537 = vmatprep.subr.mxu1 %v2782_v8  ;;  %2530 = vmatmul.mubr.msk.f32.vlgmr.msra.gmra.mrb[2].mxu1 %vm686_vm11, %v2468_v13 }
 0x109   : > { %1913 = vrot.lane.b32.xlu1 %v1901_v14, %s2790_s14  ;;  %v1738_v18 = vsel %vm550_vm3, %v3119_v41, %v1712_v22  ;;  %2539 = vmatprep.mubr.msk.f32.mxu1 %vm2794_vm2, %v2782_v8 }
 0x10a   : > { %v1739_v56 = vsel %vm552_vm4, %v1738_v18, %v1716_v26 }
 0x10b   : > { %1735 = vrot.lane.b32.xlu0 %v1709_v17, %s2791_s23 }
 0x10c   : > { %v1720_v57 = vpop.permute.xlu0 %1719 }
 0x10d   : > { %1731 = vrot.lane.b32.xlu1 %v1705_v42, %s2793_s7  ;;  %v3349_v41 = vsel %vm554_vm5, %v1739_v56, %v1720_v57  ;;  %v2460_v42 = vld [vmem:[%s3581_s2 + $0x8] sm:$0xff] }
 0x10f   : > { %2107 = vrot.lane.b32.xlu0 %v2095_v59, %s2790_s14  ;;  %s2457_s14 = sshll.u32 %s2962_s6, 2 }
 0x111   : > { %2103 = vrot.lane.b32.xlu1 %v2077_v51, %s2789_s15 }
 0x113   : > { %2111 = vrot.lane.b32.xlu0 %v2086_v60, %s2788_s12  ;;  %s443_s12 = sadd.s32 %s2458_s22, %s441_s21 }
 0x114   : > { %s2459_s15 = sshll.u32 %s443_s12, 2 }
 0x115   : > { %1921 = vrot.lane.b32.xlu1 %v1902_v63, %s2792_s18  ;;  %s445_s20 = scalar_lea.vmem %s3583_s17, %s2459_s15  ;;  %s2308_s15 = scalar_lea.sflag [#allocation5], %s2962_s6 }
 0x117   : > { %2115 = vrot.lane.b32.xlu0 %v2096_v52, %s2792_s18 }
 0x119   : > { %1925 = vrot.lane.b32.xlu1 %v1899_v0, %s2793_s7 }
 0x11b   : > { %2123 = vrot.lane.b32.xlu0 %v2097_v10, %s2791_s23 }
 0x11d   : > { %1929 = vrot.lane.b32.xlu1 %v1903_v11, %s2791_s23  ;;  %s2488_s23 = sshll.u32 %s2768_s30, 1  ;;  %s3584_s30 = sld [smem:[#allocation14_spill]] }
 0x11e   : > { %s2319_s0 = sadd.s32 %s2764_s29, %s2488_s23 }
 0x11f   : > { %s2489_s1 = sshll.u32 %s2319_s0, 6  ;;  %s2796_s0 = smov [#allocation4]  }
 0x121   : > { %2119 = vrot.lane.b32.xlu1 %v2093_v53, %s2793_s7 }
 0x123   : > { %s3585_s12 = smov %s3584_s30  ;;  %s3496_s3 = scalar_lea.hbm %s3584_s30, %s2489_s1 }
 0x125   : > { %2215 = vperm.xlu1 %2664, %v2212_v62  }
 0x137   : > { %v655_v15 = vpop.permute.xlu1 %654 }
 0x138   : > { %v671_v12 = vpop.permute.xlu0 %670 }
 0x13b   : > { %v663_v16 = vpop.permute.xlu1 %662 }
 0x13c   : > { %v651_v20 = vpop.permute.xlu0 %650 }
 0x13d   : > { %v677_v54 = vsel %vm550_vm3, %v3141_v5, %v651_v20 }
 0x13e   : > { %v678_v32 = vsel %vm552_vm4, %v677_v54, %v655_v15 }
 0x13f   : > { %v926_v21 = vpop.permute.xlu1 %925 }
 0x141   : > { %v922_v23 = vpop.permute.xlu0 %921 }
 0x142   : > { %v948_v55 = vsel %vm550_vm3, %v3157_v31, %v922_v23 }
 0x143   : > { %v934_v24 = vpop.permute.xlu1 %933  ;;  %v949_v34 = vsel %vm552_vm4, %v948_v55, %v926_v21 }
 0x145   : > { %v930_v30 = vpop.permute.xlu0 %929 }
 0x146   : > { %v950_v35 = vsel %vm554_vm5, %v949_v34, %v930_v30 }
 0x147   : > { %v942_v28 = vpop.permute.xlu1 %941  ;;  %v951_v5 = vsel %vm556_vm6, %v950_v35, %v934_v24 }
 0x149   : > { %v938_v9 = vpop.permute.xlu0 %937 }
 0x14a   : > { %v952_v31 = vsel %vm558_vm7, %v951_v5, %v938_v9 }
 0x14b   : > { %v659_v6 = vpop.permute.xlu1 %658  ;;  %v953_v44 = vsel %vm560_vm8, %v952_v31, %v942_v28 }
 0x14c   : > { %v679_v33 = vsel %vm554_vm5, %v678_v32, %v659_v6  ;;  %v2477_v6 = vld [vmem:[%s3581_s2 + $0x30] sm:$0xff] }
 0x14d   : > { %v946_v36 = vpop.permute.xlu0 %945  ;;  %v680_v38 = vsel %vm556_vm6, %v679_v33, %v663_v16 }
 0x14e   : > { %v954_v45 = vsel %vm562_vm9, %v953_v44, %v946_v36  ;;  %v2480_v44 = vld [vmem:[%s3581_s2 + $0x38] sm:$0xff] }
 0x14f   : > { %v667_v37 = vpop.permute.xlu1 %666 }
 0x150   : > { %v681_v25 = vsel %vm558_vm7, %v680_v38, %v667_v37 }
 0x151   : > { %v1517_v27 = vpop.permute.xlu0 %1516  ;;  %v682_v40 = vsel %vm560_vm8, %v681_v25, %v671_v12 }
 0x153   : > { %v675_v29 = vpop.permute.xlu1 %674 }
 0x154   : > { %v683_v43 = vsel %vm562_vm9, %v682_v40, %v675_v29 }
 0x155   : > { %2513 = vmatpush3.msk.msra.mxu0 %vm690_vm10, %v683_v43  ;;  %v1525_v3 = vpop.permute.xlu0 %1524 }
 0x156   : > { %2522 = vmatprep.subr.mxu0 %v2782_v8  ;;  %2515 = vmatmul.mubr.msk.f32.vlgmr.msra.gmra.mrb[0].mxu0 %vm686_vm11, %v2460_v42 }
 0x157   : > { %v1323_v46 = vpop.permute.xlu1 %1322  ;;  %2523 = vmatpush3.msk.msra.mxu0 %vm690_vm10, %v954_v45  ;;  %2524 = vmatprep.mubr.msk.f32.mxu0 %vm2794_vm2, %v2782_v8 }
 0x158   : > { %2532 = vmatprep.subr.mxu0 %v2782_v8 }
 0x159   : > { %v1319_v48 = vpop.permute.xlu0 %1318 }
 0x15a   : > { %2525 = vmatmul.mubr.msk.f32.vlgmr.msra.gmra.mrb[2].mxu0 %vm686_vm11, %v2465_v47  ;;  %v1345_v13 = vsel %vm550_vm3, %v3210_v19, %v1319_v48  ;;  %v2471_v19 = vld [vmem:[%s3581_s2 + $0x20] sm:$0xff] }
 0x15b   : > { %v1331_v14 = vpop.permute.xlu1 %1330  ;;  %2534 = vmatprep.mubr.msk.f32.mxu0 %vm2794_vm2, %v2782_v8  ;;  %v1346_v26 = vsel %vm552_vm4, %v1345_v13, %v1323_v46  ;;  %v2483_v13 = vld [vmem:[%s3581_s2 + $0x40] sm:$0xff] }
 0x15d   : > { %v1327_v17 = vpop.permute.xlu0 %1326 }
 0x15e   : > { %v1347_v22 = vsel %vm554_vm5, %v1346_v26, %v1327_v17 }
 0x15f   : > { %v1339_v18 = vpop.permute.xlu1 %1338  ;;  %v1348_v1 = vsel %vm556_vm6, %v1347_v22, %v1331_v14 }
 0x161   : > { %v1335_v49 = vpop.permute.xlu0 %1334 }
 0x162   : > { %v1349_v51 = vsel %vm558_vm7, %v1348_v1, %v1335_v49 }
 0x163   : > { %v1513_v56 = vpop.permute.xlu1 %1512  ;;  %v1350_v57 = vsel %vm560_vm8, %v1349_v51, %v1339_v18 }
 0x164   : > { %v1539_v63 = vsel %vm550_vm3, %v3231_v39, %v1513_v56  ;;  %v2474_v39 = vld [vmem:[%s3581_s2 + $0x28] sm:$0xff]  ;;  %s436_s2 = scalar_lea.vmem [#allocation4], %s2457_s14  ;;  %s2674_s14 = sshll.u32 %s2796_s0, 4  ;;  %s2675_s14 = int_to_ptr.vmem [resolvable:$false] %s2674_s14 }
 0x165   : > { %v1343_v58 = vpop.permute.xlu0 %1342  ;;  %v1540_v53 = vsel %vm552_vm4, %v1539_v63, %v1517_v27  ;;  %s2323_s25 = sshll.u32 %s436_s2, 4  ;;  %s2676_s23 = scalar_lea.vmem %s2675_s14, 128  ;;  %s3498_s25 = int_to_ptr.vmem [resolvable:$true] %s2323_s25 }
 0x166   : > { %v1351_v59 = vsel %vm562_vm9, %v1350_v57, %v1343_v58  ;;  %s2670_s29 = scalar_lea.vmem %s3498_s25, 64  ;;  %p2677_p9 = scmp.lt.s32.totalorder %s3498_s25, %s2675_s14 }
 0x167   : > { %v1521_v50 = vpop.permute.xlu1 %1520  ;;  %2533 = vmatpush3.msk.msra.mxu0 %vm690_vm10, %v1351_v59  ;;  %p2671_p6 = scmp.ne.s32.totalorder %s3498_s25, %s2670_s29  ;;  %p2678_p10 = scmp.lt.s32.totalorder %s2676_s23, %s2670_s29 }
 0x168   : > { %2542 = vmatprep.subr.mxu0 %v2782_v8  ;;  %2535 = vmatmul.mubr.msk.f32.vlgmr.msra.gmra.mrb[4].mxu0 %vm686_vm11, %v2471_v19  ;;  %v1541_v2 = vsel %vm554_vm5, %v1540_v53, %v1521_v50 }
 0x169   : > { %v1533_v60 = vpop.permute.xlu0 %1532  ;;  %2544 = vmatprep.mubr.msk.f32.mxu0 %vm2794_vm2, %v2782_v8  ;;  %v1542_v11 = vsel %vm556_vm6, %v1541_v2, %v1525_v3  ;;  %p2672_p7 = pnand %p2671_p6, %p2928_p11  ;;  %p2679_p12 = por %p2678_p10, %p2677_p9 }
 0x16b   : > { %v1529_v61 = vpop.permute.xlu1 %1528  ;;  %p2673_p8 = pneg %p2672_p7 }
 0x16c   : > { %v1543_v15 = vsel %vm558_vm7, %v1542_v11, %v1529_v61 }
 0x16d   : > { %v1910_v52 = vpop.permute.xlu0 %1909  ;;  %v1544_v20 = vsel %vm560_vm8, %v1543_v15, %v1533_v60  ;;  %p2680_p0 = pnand %p2679_p12, %p2673_p8 }
 0x16f   : > { %v1906_v0 = vpop.permute.xlu1 %1905 }
 0x171   : > { %v1728_v10 = vpop.permute.xlu0 %1727 }
 0x173   : > { %v1724_v62 = vpop.permute.xlu1 %1723 }
 0x174   : > { %v1741_v30 = vsel %vm556_vm6, %v3349_v41, %v1724_v62  ;;  %v1932_v41 = vsel %vm550_vm3, %v3267_v7, %v1906_v0 }
 0x175   : > { %v2100_v12 = vpop.permute.xlu0 %2099  ;;  %v1742_v55 = vsel %vm558_vm7, %v1741_v30, %v1728_v10  ;;  %v1933_v37 = vsel %vm552_vm4, %v1932_v41, %v1910_v52 }
 0x176   : > { %v2126_v25 = vsel %vm550_vm3, %v3295_v4, %v2100_v12 }
 0x177   : > { %v1537_v16 = vpop.permute.xlu1 %1536 }
 0x178   : > { %v1545_v21 = vsel %vm562_vm9, %v1544_v20, %v1537_v16 }
 0x179   : > { %2538 = vmatpush3.msk.msra.mxu1 %vm690_vm10, %v1545_v21  ;;  %v1918_v23 = vpop.permute.xlu0 %1917 }
 0x17a   : > { %2540 = vmatmul.mubr.msk.f32.vlgmr.msra.gmra.mrb[4].mxu1 %vm686_vm11, %v2474_v39  ;;  %2547 = vmatprep.subr.mxu1 %v2782_v8 }
 0x17b   : > { %v1914_v24 = vpop.permute.xlu1 %1913  ;;  %2549 = vmatprep.mubr.msk.f32.mxu1 %vm2794_vm2, %v2782_v8 }
 0x17c   : > { %v1934_v38 = vsel %vm554_vm5, %v1933_v37, %v1914_v24  ;;  %v2221_v24 = vld [vmem:[%s3560_s4] sm:$0xf] }
 0x17d   : > { %v1736_v28 = vpop.permute.xlu0 %1735  ;;  %v1935_v27 = vsel %vm556_vm6, %v1934_v38, %v1918_v23 }
 0x17f   : > { %v1732_v54 = vpop.permute.xlu1 %1731 }
 0x180   : > { %v1743_v9 = vsel %vm560_vm8, %v1742_v55, %v1732_v54 }
 0x181   : > { %v1744_v32 = vsel %vm562_vm9, %v1743_v9, %v1736_v28  ;;  %v2108_v33 = vpop.permute.xlu0 %2107 }
 0x182   : > { %2543 = vmatpush3.msk.msra.mxu0 %vm690_vm10, %v1744_v32 }
 0x183   : > { %v2104_v34 = vpop.permute.xlu1 %2103  ;;  %2545 = vmatmul.mubr.msk.f32.vlgmr.msra.gmra.mrb[6].mxu0 %vm686_vm11, %v2477_v6  ;;  %2552 = vmatprep.subr.mxu0 %v2782_v8  ;;  %v2304_v6 = vld [vmem:[%s445_s20] sm:$0xf] }
 0x184   : > { %2554 = vmatprep.mubr.msk.f32.mxu0 %vm2794_vm2, %v2782_v8  ;;  %v2127_v31 = vsel %vm552_vm4, %v2126_v25, %v2104_v34 }
 0x185   : > { %v2112_v36 = vpop.permute.xlu0 %2111  ;;  %v2128_v42 = vsel %vm554_vm5, %v2127_v31, %v2108_v33 }
 0x186   : > { %v2129_v4 = vsel %vm556_vm6, %v2128_v42, %v2112_v36 }
 0x187   : > { %v1922_v35 = vpop.permute.xlu1 %1921 }
 0x188   : > { %v1936_v29 = vsel %vm558_vm7, %v1935_v27, %v1922_v35 }
 0x189   : > { %v2116_v40 = vpop.permute.xlu0 %2115 }
 0x18a   : > { %v2130_v3 = vsel %vm558_vm7, %v2129_v4, %v2116_v40 }
 0x18b   : > { %v1926_v5 = vpop.permute.xlu1 %1925 }
 0x18c   : > { %v1937_v7 = vsel %vm560_vm8, %v1936_v29, %v1926_v5 }
 0x18d   : > { %v2124_v47 = vpop.permute.xlu0 %2123 }
 0x18f   : > { %v1930_v43 = vpop.permute.xlu1 %1929 }
 0x190   : > { %v1938_v45 = vsel %vm562_vm9, %v1937_v7, %v1930_v43 }
 0x191   : > { %2548 = vmatpush3.msk.msra.mxu1 %vm690_vm10, %v1938_v45 }
 0x192   : > { %2550 = vmatmul.mubr.msk.f32.vlgmr.msra.gmra.mrb[6].mxu1 %vm686_vm11, %v2480_v44  ;;  %2557 = vmatprep.subr.mxu1 %v2782_v8 }
 0x193   : > { %v2120_v46 = vpop.permute.xlu1 %2119  ;;  %2559 = vmatprep.mubr.msk.f32.mxu1 %vm2794_vm2, %v2782_v8  ;;  %v2222_v8 = vld [vmem:[%s3561_s5] sm:$0xf] }
 0x194   : > { %v2131_v48 = vsel %vm560_vm8, %v2130_v3, %v2120_v46  ;;  %2225 = vperm.xlu0 %2665, %v2222_v8  }
 0x195   : > { %v2132_v14 = vsel %vm562_vm9, %v2131_v48, %v2124_v47 }
 0x196   : > { %2553 = vmatpush3.msk.msra.mxu0 %vm690_vm10, %v2132_v14 }
 0x197   : > { %2555 = vmatmul.mubr.msk.f32.vlgmr.msra.gmra.mrb[8].mxu0 %vm686_vm11, %v2483_v13 }
 0x1a4   : > { %v2216_v12 = vpop.permute.xlu1 %2215 }
 0x1cf   : > { %v836_v26 = vpop.f32.mrb[0].mxu1 }
 0x1d0   : > { %v2521_v17 = vpop.f32.mrb[1].mxu1 }
 0x1db   : > { %v1232_v22 = vpop.f32.mrb[2].mxu1 }
 0x1dc   : > { %v2531_v18 = vpop.f32.mrb[3].mxu1 }
 0x213   : > { %v2226_v30 = vpop.permute.xlu0 %2225 }
 0x229   : > { %v760_v1 = vpop.f32.mrb[0].mxu0 }
 0x22a   : > { %v2516_v49 = vpop.f32.mrb[1].mxu0  ;;  %v837_v51 = vadd.f32 %v836_v26, %v760_v1 }
 0x22d   : > { %v1029_v56 = vpop.f32.mrb[2].mxu0 }
 0x22e   : > { %v1033_v57 = vadd.f32 %v1029_v56, %v837_v51  ;;  %v2526_v58 = vpop.f32.mrb[3].mxu0 }
 0x230   : > { %v1236_v19 = vadd.f32 %v1232_v22, %v1033_v57 }
 0x23b   : > { %v1426_v59 = vpop.f32.mrb[4].mxu0 }
 0x23c   : > { %v1430_v50 = vadd.f32 %v1426_v59, %v1236_v19  ;;  %v2536_v60 = vpop.f32.mrb[5].mxu0 }
 0x24d   : > { %v1620_v61 = vpop.f32.mrb[4].mxu1 }
 0x24e   : > { %v1624_v63 = vadd.f32 %v1620_v61, %v1430_v50  ;;  %v2541_v52 = vpop.f32.mrb[5].mxu1 }
 0x256   : > { %v1819_v53 = vpop.f32.mrb[6].mxu0 }
 0x257   : > { %v1823_v0 = vadd.f32 %v1819_v53, %v1624_v63  ;;  %v2546_v2 = vpop.f32.mrb[7].mxu0 }
 0x265   : > { %v2013_v10 = vpop.f32.mrb[6].mxu1 }
 0x266   : > { %v2017_v11 = vadd.f32 %v2013_v10, %v1823_v0  ;;  %v2551_v62 = vpop.f32.mrb[7].mxu1 }
 0x26a   : > { %v2207_v15 = vpop.f32.mrb[8].mxu0 }
 0x26b   : > { %v2211_v16 = vadd.f32 %v2207_v15, %v2017_v11  ;;  %v2556_v20 = vpop.f32.mrb[9].mxu0 }
 0x26d   : > { %v2218_v39 = vadd.f32 %v2216_v12, %v2211_v16 }
 0x26f   : > { %v2219_v21 = vmul.f32 0.01, %v2218_v39 }
 0x271   : > { %v2220_v23 = vmax.f32 %v2218_v39, %v2219_v21 }
 0x273   : > { %2558 = vmatpush3.msra.mxu1 %v2220_v23 }
 0x274   : > { %2560 = vmatmul.mubr.msk.f32.vlgmr.msra.gmra.mrb[8].mxu1 %vm2228_vm12, %v2221_v24 }
 0x347   : > { %v2298_v28 = vpop.f32.mrb[8].mxu1 }
 0x348   : > { %v2299_v54 = vadd.f32 %v2298_v28, %v2226_v30  ;;  %v2561_v55 = vpop.f32.mrb[9].mxu1 }
 0x34a   : > { %v2302_v9 = vmul.f32 0.01, %v2299_v54 }
 0x34c   : > { %v2303_v32 = vmax.f32 %v2299_v54, %v2302_v9 }
 0x34e   : > { %v2305_v33 = vadd.f32 %v2304_v6, %v2303_v32 }
 0x350   : > { %2306 = vst [vmem:[%s436_s2] sm:$0xf] %v2305_v33 }
 0x351   : > { %2683 = shalt.err (!%p2680_p0)
}
 0x352   : > { %s2684_s1 = scalar_lea.hbm %s3496_s3, 64  ;;  %s2688_s18 = scalar_lea.hbm %s3585_s12, 256 }
 0x353   : > { %p2685_p1 = scmp.ne.s32.totalorder %s3496_s3, %s2684_s1  ;;  %p2689_p4 = scmp.lt.u32.totalorder %s3496_s3, %s3585_s12 }
 0x354   : > { %p2690_p5 = scmp.lt.u32.totalorder %s2688_s18, %s2684_s1  ;;  %p2692_p7 = scmp.lt.u32.totalorder %s2684_s1, %s3496_s3 }
 0x355   : > { %p2686_p2 = pnand %p2685_p1, %p2928_p11 }
 0x356   : > { %p2691_p6 = por %p2690_p5, %p2689_p4 }
 0x357   : > { %p2687_p3 = pneg %p2686_p2 }
 0x358   : > { %p2693_p8 = por %p2692_p7, %p2691_p6 }
 0x35a   : > { %p2694_p9 = pnand %p2693_p8, %p2687_p3 }
 0x35c   : > { %2697 = shalt.err (!%p2694_p9)
}
 0x35d   : > { %2563 = dma.vmem_to_hbm [thread:$0]  (%p2928_p11), %s3498_s25, 64, %s3496_s3, %s2308_s15  }
 0x35e PF: > { %p2569_p10 = scmp.ge.s32.totalorder %s2780_s10, 2  ;;  %s2335_s20 = sand.u32 1, %s2744_s24  }
 0x35f   : > { %s2336_s21 = scalar_lea.sflag [#allocation5], %s2335_s20 }
 0x360   : > { %p2566_p12 = pnand %p2569_p10, %p2938_p13 }
 0x362   : > { %2739 = dma.done.wait (!%p2566_p12), %s2336_s21, 64  }
 0x363   : > { %2741 = vsyncadd (!%p2566_p12), %s2336_s21, 4294967232  ;;  %s20_s10 = sadd.s32 1, %s2780_s10   ;;  %s3586_s3 = sld [smem:[#allocation7_spill]] }
 0x364   : > { %p17_p0 = scmp.ge.s32.totalorder %s20_s10, 6   ;;  %s3587_s13 = sld [smem:[#allocation8_spill]] }
 0x365   : > { %s3588_s24 = smov %s2756_s27  ;;  %s3589_s25 = smov %s2752_s26 }
 0x366   : > { %s3590_s26 = smov %s2936_s16  ;;  %s3591_s27 = smov %s2760_s28 }
 0x367   : > { %s3592_s28 = smov %s2933_s19  ;;  %s3593_s29 = smov %s2772_s8 }
 0x368   : > { %s3594_s30 = smov %s2776_s9  ;;  %19 = sbr.rel (!%p17_p0) target bundleno = 13 (0xd), region = 183 }
 0x369   : > { %s3595_s8 = smov %s3586_s3 }
 0x36a   : > { %s3596_s9 = smov %s3587_s13 }
 0x36f   :  { %2341 = vsyncpa [#allocation5], 1 }
 0x370   :  { %2343 = vsyncpa [#allocation5 + $0x1], 1 }

</bundles_post_ra>
